<compile_context>
chip_gen: v6e
topology: v6e:2x2x1
jax: 0.10.0
libtpu: 0.0.40
codegen_flags: <defaults>
</compile_context>

<pallas_src>
import jax
import jax.numpy as jnp
from jax.experimental import pallas as pl
from jax.experimental.pallas import tpu as pltpu


# --------------------- kernel 1: embedding gather + LSTM cell ----------------

def _lstm_step_kernel(ids_ref, emb_hbm, w_gates_ref, b_gates_ref, h0_ref, c0_ref,
                      h_out_ref, c_out_ref, x_buf, dma_sems):
    """One decoder LSTM step.

    ids_ref   : (B,)        int32   token ids (SMEM)
    emb_hbm   : (V, E)      f32     embedding table (stays in HBM)
    w_gates   : (4, E+H, H) f32     fused [W_ih; W_hh]^T per gate (i, f, g, o)
    b_gates   : (4, 1, H)   f32     combined bias (b_ih + b_hh) per gate
    h0, c0    : (B, H)      f32     previous hidden / cell state
    outputs   : h_out (B, H), c_out (B, H)     (aliased onto h0 / c0)
    scratch   : x_buf (B, E) f32 gather target, dma_sems (B,) DMA semaphores
    """
    B = h0_ref.shape[0]

    # Gather the B embedding rows straight from HBM (row DMAs, table never
    # pulled into VMEM in full).
    for b in range(B):
        pltpu.make_async_copy(
            emb_hbm.at[pl.ds(ids_ref[b], 1), :],
            x_buf.at[pl.ds(b, 1), :],
            dma_sems.at[b],
        ).start()
    for b in range(B):
        pltpu.make_async_copy(
            emb_hbm.at[pl.ds(ids_ref[b], 1), :],
            x_buf.at[pl.ds(b, 1), :],
            dma_sems.at[b],
        ).wait()

    # relu(embedded)
    x = jnp.maximum(x_buf[...], 0.0)                               # (B, E) f32

    # Fused input+hidden operand; four lane-aligned per-gate matmuls
    # (PyTorch gate order i, f, g, o), all elementwise math in f32.
    xh = jnp.concatenate([x, h0_ref[...]], axis=1)                 # (B, E+H)

    def gate(g):
        return (jnp.dot(xh, w_gates_ref[g], preferred_element_type=jnp.float32)
                + b_gates_ref[g])

    i_g = jax.nn.sigmoid(gate(0))
    f_g = jax.nn.sigmoid(gate(1))
    g_g = jnp.tanh(gate(2))
    o_g = jax.nn.sigmoid(gate(3))

    c_new = f_g * c0_ref[...] + i_g * g_g
    h_new = o_g * jnp.tanh(c_new)

    h_out_ref[...] = h_new
    c_out_ref[...] = c_new


# --------------------- kernel 2: vocab projection (tiled over V) -------------

def _fc_kernel(h_ref, w_ref, b_ref, out_ref):
    """out[:, j*TN:(j+1)*TN] = h @ W_fc^T tile + b tile (bf16 weights, f32 acc)."""
    h = h_ref[...].astype(w_ref.dtype)        # bf16 on the MXU
    out_ref[...] = (jnp.dot(h, w_ref[...], preferred_element_type=jnp.float32)
                    + b_ref[...])


# ------------------------------- wrapper --------------------------------------

def make_decoder_step(params, *, fc_tile=256, weight_dtype=jnp.bfloat16):
    """Prepare parameters once, return a jitted per-token decoder step.

    params uses PyTorch layouts:
      embedding (V, E), w_ih (4H, E), w_hh (4H, H), b_ih (4H,), b_hh (4H,),
      w_fc (V, H), b_fc (V,)
    """
    assert fc_tile % 128 == 0, "FC vocab tile must be a multiple of 128 lanes"

    emb = params["embedding"].astype(jnp.float32)       # f32 rows -> DMA-safe gather
    w_ih, w_hh = params["w_ih"], params["w_hh"]
    V, E = emb.shape
    H = w_hh.shape[1]

    # --- one-time weight massaging (hoisted off the per-token call path) ----
    # Per-gate fused [W_ih; W_hh]^T blocks so the kernel never lane-slices 4H.
    w_cat = jnp.concatenate([w_ih, w_hh], axis=1)                   # (4H, E+H)
    w_gates = w_cat.reshape(4, H, E + H).transpose(0, 2, 1).astype(jnp.float32)
    b_gates = (params["b_ih"] + params["b_hh"]).reshape(4, 1, H).astype(jnp.float32)

    # FC weight stream: transposed, bf16, zero-padded along V to the tile size.
    tn = fc_tile
    n_tiles = -(-V // tn)
    v_pad = n_tiles * tn
    w_fc_t = jnp.zeros((H, v_pad), weight_dtype).at[:, :V].set(
        params["w_fc"].T.astype(weight_dtype))
    b_fc = jnp.zeros((1, v_pad), jnp.float32).at[:, :V].set(
        params["b_fc"].astype(jnp.float32)[None, :])

    vmem = pl.BlockSpec(memory_space=pltpu.MemorySpace.VMEM)
    smem = pl.BlockSpec(memory_space=pltpu.MemorySpace.SMEM)
    hbm = pl.BlockSpec(memory_space=pl.ANY)

    @jax.jit
    def step(token_ids, hidden_state, cell_state):
        B = token_ids.shape[0]
        ids = token_ids.astype(jnp.int32).reshape(B)
        h0 = hidden_state.reshape(B, H).astype(jnp.float32)
        c0 = cell_state.reshape(B, H).astype(jnp.float32)

        # ---- kernel 1: embedding gather + ReLU + LSTM cell (in-place h/c) ----
        h_new, c_new = pl.pallas_call(
            _lstm_step_kernel,
            out_shape=(jax.ShapeDtypeStruct((B, H), jnp.float32),
                       jax.ShapeDtypeStruct((B, H), jnp.float32)),
            in_specs=[smem, hbm, vmem, vmem, vmem, vmem],
            out_specs=(vmem, vmem),
            scratch_shapes=[pltpu.VMEM((B, E), jnp.float32),
                            pltpu.SemaphoreType.DMA((B,))],
            input_output_aliases={4: 0, 5: 1},       # h0 -> h_new, c0 -> c_new
        )(ids, emb, w_gates, b_gates, h0, c0)

        # ---- kernel 2: vocab projection, tiled over V (lane-dense blocks) ----
        pred_pad = pl.pallas_call(
            _fc_kernel,
            out_shape=jax.ShapeDtypeStruct((B, v_pad), jnp.float32),
            grid=(n_tiles,),
            in_specs=[pl.BlockSpec((B, H), lambda j: (0, 0)),
                      pl.BlockSpec((H, tn), lambda j: (0, j)),
                      pl.BlockSpec((1, tn), lambda j: (0, j))],
            out_specs=pl.BlockSpec((B, tn), lambda j: (0, j)),
            compiler_params=pltpu.CompilerParams(
                dimension_semantics=("parallel",),
                vmem_limit_bytes=32 * 1024 * 1024),
        )(h_new, w_fc_t, b_fc)

        pred = pred_pad[:, :V]
        return pred, h_new.reshape(1, B, H), c_new.reshape(1, B, H)

    return step


# ------------------------------ f32 reference ---------------------------------

def _reference_forward_f32(token_ids, hidden_state, cell_state, params):
    """Pure-JAX f32 reference of Decoder.forward (PyTorch semantics)."""
    H = hidden_state.shape[-1]
    x = jnp.maximum(params["embedding"][token_ids.astype(jnp.int32)], 0.0)
    h0, c0 = hidden_state[0], cell_state[0]
    gates = (x @ params["w_ih"].T + h0 @ params["w_hh"].T
             + params["b_ih"] + params["b_hh"])
    i_g = jax.nn.sigmoid(gates[:, 0 * H:1 * H])
    f_g = jax.nn.sigmoid(gates[:, 1 * H:2 * H])
    g_g = jnp.tanh(gates[:, 2 * H:3 * H])
    o_g = jax.nn.sigmoid(gates[:, 3 * H:4 * H])
    c_new = f_g * c0 + i_g * g_g
    h_new = o_g * jnp.tanh(c_new)
    pred = h_new @ params["w_fc"].T + params["b_fc"]
    return pred, h_new[None], c_new[None]


if __name__ == "__main__":
    # Small sizes consistent with the module's forward pass.
    B = 8      # batch
    V = 500    # word_in_target (padded to 512 internally -> 2 vocab tiles)
    E = 32     # embeddings_dim
    H = 64     # hidden_Dimention (num_layers = 1)

    key = jax.random.PRNGKey(0)
    keys = jax.random.split(key, 10)

    params = {
        "embedding": jax.random.normal(keys[0], (V, E), jnp.float32) * 0.1,
        "w_ih": jax.random.normal(keys[1], (4 * H, E), jnp.float32) * 0.1,
        "w_hh": jax.random.normal(keys[2], (4 * H, H), jnp.float32) * 0.1,
        "b_ih": jax.random.normal(keys[3], (4 * H,), jnp.float32) * 0.1,
        "b_hh": jax.random.normal(keys[4], (4 * H,), jnp.float32) * 0.1,
        "w_fc": jax.random.normal(keys[5], (V, H), jnp.float32) * 0.1,
        "b_fc": jax.random.normal(keys[6], (V,), jnp.float32) * 0.1,
    }

    token_ids = jax.random.randint(keys[7], (B,), 0, V, jnp.int32)
    h0 = jax.random.normal(keys[8], (1, B, H), jnp.float32)
    c0 = jax.random.normal(keys[9], (1, B, H), jnp.float32)

    decoder_step = make_decoder_step(params, fc_tile=256)
    pred, h1, c1 = decoder_step(token_ids, h0, c0)
    jax.block_until_ready((pred, h1, c1))

    assert pred.shape == (B, V) and h1.shape == (1, B, H) and c1.shape == (1, B, H)

    # Correctness vs. pure-f32 reference of the same PyTorch math.  The LSTM
    # path is full f32 (tight match); the prediction streams bf16 FC weights
    # on the MXU, so allow ~1e-3-level deviation there.
    pred_r, h1_r, c1_r = _reference_forward_f32(token_ids, h0, c0, params)
    assert jnp.allclose(h1, h1_r, atol=1e-4), float(jnp.abs(h1 - h1_r).max())
    assert jnp.allclose(c1, c1_r, atol=1e-4), float(jnp.abs(c1 - c1_r).max())
    assert jnp.allclose(pred, pred_r, atol=2e-2), float(jnp.abs(pred - pred_r).max())

    print("KERNEL_OK")
</pallas_src>

<mosaic_0001>
module attributes {stable_mosaic.version = 11 : i64} {
  func.func @_fc_kernel(%arg0: i32, %arg1: memref<8x64xf32, #tpu.memory_space<vmem>>, %arg2: memref<64x256xbf16, #tpu.memory_space<vmem>>, %arg3: memref<1x256xf32, #tpu.memory_space<vmem>>, %arg4: memref<8x256xf32, #tpu.memory_space<vmem>>) attributes {dimension_semantics = [#tpu.dimension_semantics<parallel>], iteration_bounds = array<i64: 2>, scalar_prefetch = 0 : i64, scratch_operands = 0 : i64, tpu.core_type = #tpu.core_type<tc>, window_params = [{pipeline_mode = #tpu.pipeline_mode<synchronous>, transform_indices = @transform_0, window_bounds = array<i64: 8, 64>}, {transform_indices = @transform_1, window_bounds = array<i64: 64, 256>}, {transform_indices = @transform_2, window_bounds = array<i64: 1, 256>}, {transform_indices = @transform_3, window_bounds = array<i64: 8, 256>}]} {
    %c0 = arith.constant 0 : index
    %c0_0 = arith.constant 0 : index
    %0 = vector.load %arg1[%c0, %c0_0] : memref<8x64xf32, #tpu.memory_space<vmem>>, vector<8x64xf32>
    %1 = arith.truncf %0 : vector<8x64xf32> to vector<8x64xbf16>
    %c0_1 = arith.constant 0 : index
    %c0_2 = arith.constant 0 : index
    %2 = vector.load %arg2[%c0_1, %c0_2] : memref<64x256xbf16, #tpu.memory_space<vmem>>, vector<64x256xbf16>
    %cst = arith.constant dense<0.000000e+00> : vector<8x256xf32>
    %3 = tpu.matmul %1, %2, %cst {dimension_numbers = #tpu.dot_dimension_numbers<[1], [0], [0], [1], [0, 0, 1, 1], [], []>} : vector<8x64xbf16>, vector<64x256xbf16>, vector<8x256xf32> -> vector<8x256xf32>
    %c0_3 = arith.constant 0 : index
    %c0_4 = arith.constant 0 : index
    %4 = vector.load %arg3[%c0_3, %c0_4] : memref<1x256xf32, #tpu.memory_space<vmem>>, vector<1x256xf32>
    %5 = vector.broadcast %4 : vector<1x256xf32> to vector<8x256xf32>
    %6 = arith.addf %3, %5 : vector<8x256xf32>
    %c0_5 = arith.constant 0 : index
    %c0_6 = arith.constant 0 : index
    %7 = vector.load %arg4[%c0_5, %c0_6] : memref<8x256xf32, #tpu.memory_space<vmem>>, vector<8x256xf32>
    tpu.vector_store %arg4[%c0_5, %c0_6], %6 {strides = array<i32>} : memref<8x256xf32, #tpu.memory_space<vmem>>, vector<8x256xf32>,
    return
  }
  func.func @transform_0(%arg0: i32) -> (i32, i32) {
    %c0_i32 = arith.constant 0 : i32
    %c0_i32_0 = arith.constant 0 : i32
    %c0_i32_1 = arith.constant 0 : i32
    return %c0_i32, %c0_i32_0 : i32, i32
  }
  func.func @transform_1(%arg0: i32) -> (i32, i32) {
    %c0_i32 = arith.constant 0 : i32
    %c0_i32_0 = arith.constant 0 : i32
    return %c0_i32, %arg0 : i32, i32
  }
  func.func @transform_2(%arg0: i32) -> (i32, i32) {
    %c0_i32 = arith.constant 0 : i32
    %c0_i32_0 = arith.constant 0 : i32
    return %c0_i32, %arg0 : i32, i32
  }
  func.func @transform_3(%arg0: i32) -> (i32, i32) {
    %c0_i32 = arith.constant 0 : i32
    %c0_i32_0 = arith.constant 0 : i32
    return %c0_i32, %arg0 : i32, i32
  }
}

module attributes {stable_mosaic.version = 11 : i64} {
  func.func @_lstm_step_kernel(%arg0: memref<8xi32, #tpu.memory_space<smem>>, %arg1: memref<500x32xf32, #tpu.memory_space<any>>, %arg2: memref<4x96x64xf32, #tpu.memory_space<vmem>>, %arg3: memref<4x1x64xf32, #tpu.memory_space<vmem>>, %arg4: memref<8x64xf32, #tpu.memory_space<vmem>>, %arg5: memref<8x64xf32, #tpu.memory_space<vmem>>, %arg6: memref<8x64xf32, #tpu.memory_space<vmem>>, %arg7: memref<8x64xf32, #tpu.memory_space<vmem>>, %arg8: memref<8x32xf32, #tpu.memory_space<vmem>>, %arg9: memref<8x!tpu.dma_semaphore, #tpu.memory_space<semaphore_mem>>) attributes {dimension_semantics = [], scalar_prefetch = 0 : i64, scratch_operands = 2 : i64, tpu.core_type = #tpu.core_type<tc>} {
    %c0 = arith.constant 0 : index
    %0 = memref.load %arg0[%c0] : memref<8xi32, #tpu.memory_space<smem>>
    %c0_i32 = arith.constant 0 : i32
    %c0_i32_0 = arith.constant 0 : i32
    %1 = tpu.memref_slice %arg1[%0, %c0_i32_0] : memref<500x32xf32, #tpu.memory_space<any>> -> memref<1x32xf32, #tpu.memory_space<any>>
    %c0_i32_1 = arith.constant 0 : i32
    %c0_i32_2 = arith.constant 0 : i32
    %2 = tpu.memref_slice %arg8[%c0_i32_1, %c0_i32_2] : memref<8x32xf32, #tpu.memory_space<vmem>> -> memref<1x32xf32, #tpu.memory_space<vmem>>
    %3 = tpu.memref_slice %arg9[%c0_i32] : memref<8x!tpu.dma_semaphore, #tpu.memory_space<semaphore_mem>> -> memref<1x!tpu.dma_semaphore, #tpu.memory_space<semaphore_mem>>
    %4 = tpu.memref_squeeze %3 : memref<1x!tpu.dma_semaphore, #tpu.memory_space<semaphore_mem>> -> memref<!tpu.dma_semaphore, #tpu.memory_space<semaphore_mem>>
    tpu.enqueue_dma source(%1 : memref<1x32xf32, #tpu.memory_space<any>>) target(%2 : memref<1x32xf32, #tpu.memory_space<vmem>>) target_semaphore(%4 : memref<!tpu.dma_semaphore, #tpu.memory_space<semaphore_mem>>)
    %c1 = arith.constant 1 : index
    %5 = memref.load %arg0[%c1] : memref<8xi32, #tpu.memory_space<smem>>
    %c1_i32 = arith.constant 1 : i32
    %c0_i32_3 = arith.constant 0 : i32
    %6 = tpu.memref_slice %arg1[%5, %c0_i32_3] : memref<500x32xf32, #tpu.memory_space<any>> -> memref<1x32xf32, #tpu.memory_space<any>>
    %c1_i32_4 = arith.constant 1 : i32
    %c0_i32_5 = arith.constant 0 : i32
    %7 = tpu.memref_slice %arg8[%c1_i32_4, %c0_i32_5] : memref<8x32xf32, #tpu.memory_space<vmem>> -> memref<1x32xf32, #tpu.memory_space<vmem>>
    %8 = tpu.memref_slice %arg9[%c1_i32] : memref<8x!tpu.dma_semaphore, #tpu.memory_space<semaphore_mem>> -> memref<1x!tpu.dma_semaphore, #tpu.memory_space<semaphore_mem>>
    %9 = tpu.memref_squeeze %8 : memref<1x!tpu.dma_semaphore, #tpu.memory_space<semaphore_mem>> -> memref<!tpu.dma_semaphore, #tpu.memory_space<semaphore_mem>>
    tpu.enqueue_dma source(%6 : memref<1x32xf32, #tpu.memory_space<any>>) target(%7 : memref<1x32xf32, #tpu.memory_space<vmem>>) target_semaphore(%9 : memref<!tpu.dma_semaphore, #tpu.memory_space<semaphore_mem>>)
    %c2 = arith.constant 2 : index
    %10 = memref.load %arg0[%c2] : memref<8xi32, #tpu.memory_space<smem>>
    %c2_i32 = arith.constant 2 : i32
    %c0_i32_6 = arith.constant 0 : i32
    %11 = tpu.memref_slice %arg1[%10, %c0_i32_6] : memref<500x32xf32, #tpu.memory_space<any>> -> memref<1x32xf32, #tpu.memory_space<any>>
    %c2_i32_7 = arith.constant 2 : i32
    %c0_i32_8 = arith.constant 0 : i32
    %12 = tpu.memref_slice %arg8[%c2_i32_7, %c0_i32_8] : memref<8x32xf32, #tpu.memory_space<vmem>> -> memref<1x32xf32, #tpu.memory_space<vmem>>
    %13 = tpu.memref_slice %arg9[%c2_i32] : memref<8x!tpu.dma_semaphore, #tpu.memory_space<semaphore_mem>> -> memref<1x!tpu.dma_semaphore, #tpu.memory_space<semaphore_mem>>
    %14 = tpu.memref_squeeze %13 : memref<1x!tpu.dma_semaphore, #tpu.memory_space<semaphore_mem>> -> memref<!tpu.dma_semaphore, #tpu.memory_space<semaphore_mem>>
    tpu.enqueue_dma source(%11 : memref<1x32xf32, #tpu.memory_space<any>>) target(%12 : memref<1x32xf32, #tpu.memory_space<vmem>>) target_semaphore(%14 : memref<!tpu.dma_semaphore, #tpu.memory_space<semaphore_mem>>)
    %c3 = arith.constant 3 : index
    %15 = memref.load %arg0[%c3] : memref<8xi32, #tpu.memory_space<smem>>
    %c3_i32 = arith.constant 3 : i32
    %c0_i32_9 = arith.constant 0 : i32
    %16 = tpu.memref_slice %arg1[%15, %c0_i32_9] : memref<500x32xf32, #tpu.memory_space<any>> -> memref<1x32xf32, #tpu.memory_space<any>>
    %c3_i32_10 = arith.constant 3 : i32
    %c0_i32_11 = arith.constant 0 : i32
    %17 = tpu.memref_slice %arg8[%c3_i32_10, %c0_i32_11] : memref<8x32xf32, #tpu.memory_space<vmem>> -> memref<1x32xf32, #tpu.memory_space<vmem>>
    %18 = tpu.memref_slice %arg9[%c3_i32] : memref<8x!tpu.dma_semaphore, #tpu.memory_space<semaphore_mem>> -> memref<1x!tpu.dma_semaphore, #tpu.memory_space<semaphore_mem>>
    %19 = tpu.memref_squeeze %18 : memref<1x!tpu.dma_semaphore, #tpu.memory_space<semaphore_mem>> -> memref<!tpu.dma_semaphore, #tpu.memory_space<semaphore_mem>>
    tpu.enqueue_dma source(%16 : memref<1x32xf32, #tpu.memory_space<any>>) target(%17 : memref<1x32xf32, #tpu.memory_space<vmem>>) target_semaphore(%19 : memref<!tpu.dma_semaphore, #tpu.memory_space<semaphore_mem>>)
    %c4 = arith.constant 4 : index
    %20 = memref.load %arg0[%c4] : memref<8xi32, #tpu.memory_space<smem>>
    %c4_i32 = arith.constant 4 : i32
    %c0_i32_12 = arith.constant 0 : i32
    %21 = tpu.memref_slice %arg1[%20, %c0_i32_12] : memref<500x32xf32, #tpu.memory_space<any>> -> memref<1x32xf32, #tpu.memory_space<any>>
    %c4_i32_13 = arith.constant 4 : i32
    %c0_i32_14 = arith.constant 0 : i32
    %22 = tpu.memref_slice %arg8[%c4_i32_13, %c0_i32_14] : memref<8x32xf32, #tpu.memory_space<vmem>> -> memref<1x32xf32, #tpu.memory_space<vmem>>
    %23 = tpu.memref_slice %arg9[%c4_i32] : memref<8x!tpu.dma_semaphore, #tpu.memory_space<semaphore_mem>> -> memref<1x!tpu.dma_semaphore, #tpu.memory_space<semaphore_mem>>
    %24 = tpu.memref_squeeze %23 : memref<1x!tpu.dma_semaphore, #tpu.memory_space<semaphore_mem>> -> memref<!tpu.dma_semaphore, #tpu.memory_space<semaphore_mem>>
    tpu.enqueue_dma source(%21 : memref<1x32xf32, #tpu.memory_space<any>>) target(%22 : memref<1x32xf32, #tpu.memory_space<vmem>>) target_semaphore(%24 : memref<!tpu.dma_semaphore, #tpu.memory_space<semaphore_mem>>)
    %c5 = arith.constant 5 : index
    %25 = memref.load %arg0[%c5] : memref<8xi32, #tpu.memory_space<smem>>
    %c5_i32 = arith.constant 5 : i32
    %c0_i32_15 = arith.constant 0 : i32
    %26 = tpu.memref_slice %arg1[%25, %c0_i32_15] : memref<500x32xf32, #tpu.memory_space<any>> -> memref<1x32xf32, #tpu.memory_space<any>>
    %c5_i32_16 = arith.constant 5 : i32
    %c0_i32_17 = arith.constant 0 : i32
    %27 = tpu.memref_slice %arg8[%c5_i32_16, %c0_i32_17] : memref<8x32xf32, #tpu.memory_space<vmem>> -> memref<1x32xf32, #tpu.memory_space<vmem>>
    %28 = tpu.memref_slice %arg9[%c5_i32] : memref<8x!tpu.dma_semaphore, #tpu.memory_space<semaphore_mem>> -> memref<1x!tpu.dma_semaphore, #tpu.memory_space<semaphore_mem>>
    %29 = tpu.memref_squeeze %28 : memref<1x!tpu.dma_semaphore, #tpu.memory_space<semaphore_mem>> -> memref<!tpu.dma_semaphore, #tpu.memory_space<semaphore_mem>>
    tpu.enqueue_dma source(%26 : memref<1x32xf32, #tpu.memory_space<any>>) target(%27 : memref<1x32xf32, #tpu.memory_space<vmem>>) target_semaphore(%29 : memref<!tpu.dma_semaphore, #tpu.memory_space<semaphore_mem>>)
    %c6 = arith.constant 6 : index
    %30 = memref.load %arg0[%c6] : memref<8xi32, #tpu.memory_space<smem>>
    %c6_i32 = arith.constant 6 : i32
    %c0_i32_18 = arith.constant 0 : i32
    %31 = tpu.memref_slice %arg1[%30, %c0_i32_18] : memref<500x32xf32, #tpu.memory_space<any>> -> memref<1x32xf32, #tpu.memory_space<any>>
    %c6_i32_19 = arith.constant 6 : i32
    %c0_i32_20 = arith.constant 0 : i32
    %32 = tpu.memref_slice %arg8[%c6_i32_19, %c0_i32_20] : memref<8x32xf32, #tpu.memory_space<vmem>> -> memref<1x32xf32, #tpu.memory_space<vmem>>
    %33 = tpu.memref_slice %arg9[%c6_i32] : memref<8x!tpu.dma_semaphore, #tpu.memory_space<semaphore_mem>> -> memref<1x!tpu.dma_semaphore, #tpu.memory_space<semaphore_mem>>
    %34 = tpu.memref_squeeze %33 : memref<1x!tpu.dma_semaphore, #tpu.memory_space<semaphore_mem>> -> memref<!tpu.dma_semaphore, #tpu.memory_space<semaphore_mem>>
    tpu.enqueue_dma source(%31 : memref<1x32xf32, #tpu.memory_space<any>>) target(%32 : memref<1x32xf32, #tpu.memory_space<vmem>>) target_semaphore(%34 : memref<!tpu.dma_semaphore, #tpu.memory_space<semaphore_mem>>)
    %c7 = arith.constant 7 : index
    %35 = memref.load %arg0[%c7] : memref<8xi32, #tpu.memory_space<smem>>
    %c7_i32 = arith.constant 7 : i32
    %c0_i32_21 = arith.constant 0 : i32
    %36 = tpu.memref_slice %arg1[%35, %c0_i32_21] : memref<500x32xf32, #tpu.memory_space<any>> -> memref<1x32xf32, #tpu.memory_space<any>>
    %c7_i32_22 = arith.constant 7 : i32
    %c0_i32_23 = arith.constant 0 : i32
    %37 = tpu.memref_slice %arg8[%c7_i32_22, %c0_i32_23] : memref<8x32xf32, #tpu.memory_space<vmem>> -> memref<1x32xf32, #tpu.memory_space<vmem>>
    %38 = tpu.memref_slice %arg9[%c7_i32] : memref<8x!tpu.dma_semaphore, #tpu.memory_space<semaphore_mem>> -> memref<1x!tpu.dma_semaphore, #tpu.memory_space<semaphore_mem>>
    %39 = tpu.memref_squeeze %38 : memref<1x!tpu.dma_semaphore, #tpu.memory_space<semaphore_mem>> -> memref<!tpu.dma_semaphore, #tpu.memory_space<semaphore_mem>>
    tpu.enqueue_dma source(%36 : memref<1x32xf32, #tpu.memory_space<any>>) target(%37 : memref<1x32xf32, #tpu.memory_space<vmem>>) target_semaphore(%39 : memref<!tpu.dma_semaphore, #tpu.memory_space<semaphore_mem>>)
    %c0_24 = arith.constant 0 : index
    %40 = memref.load %arg0[%c0_24] : memref<8xi32, #tpu.memory_space<smem>>
    %c0_i32_25 = arith.constant 0 : i32
    %c0_i32_26 = arith.constant 0 : i32
    %41 = tpu.memref_slice %arg1[%40, %c0_i32_26] : memref<500x32xf32, #tpu.memory_space<any>> -> memref<1x32xf32, #tpu.memory_space<any>>
    %c0_i32_27 = arith.constant 0 : i32
    %c0_i32_28 = arith.constant 0 : i32
    %42 = tpu.memref_slice %arg8[%c0_i32_27, %c0_i32_28] : memref<8x32xf32, #tpu.memory_space<vmem>> -> memref<1x32xf32, #tpu.memory_space<vmem>>
    %43 = tpu.memref_slice %arg9[%c0_i32_25] : memref<8x!tpu.dma_semaphore, #tpu.memory_space<semaphore_mem>> -> memref<1x!tpu.dma_semaphore, #tpu.memory_space<semaphore_mem>>
    %44 = tpu.memref_squeeze %43 : memref<1x!tpu.dma_semaphore, #tpu.memory_space<semaphore_mem>> -> memref<!tpu.dma_semaphore, #tpu.memory_space<semaphore_mem>>
    tpu.wait_dma2 semaphore(%44 : memref<!tpu.dma_semaphore, #tpu.memory_space<semaphore_mem>>) src(%41 : memref<1x32xf32, #tpu.memory_space<any>>) dst(%42 : memref<1x32xf32, #tpu.memory_space<vmem>>)
    %c1_29 = arith.constant 1 : index
    %45 = memref.load %arg0[%c1_29] : memref<8xi32, #tpu.memory_space<smem>>
    %c1_i32_30 = arith.constant 1 : i32
    %c0_i32_31 = arith.constant 0 : i32
    %46 = tpu.memref_slice %arg1[%45, %c0_i32_31] : memref<500x32xf32, #tpu.memory_space<any>> -> memref<1x32xf32, #tpu.memory_space<any>>
    %c1_i32_32 = arith.constant 1 : i32
    %c0_i32_33 = arith.constant 0 : i32
    %47 = tpu.memref_slice %arg8[%c1_i32_32, %c0_i32_33] : memref<8x32xf32, #tpu.memory_space<vmem>> -> memref<1x32xf32, #tpu.memory_space<vmem>>
    %48 = tpu.memref_slice %arg9[%c1_i32_30] : memref<8x!tpu.dma_semaphore, #tpu.memory_space<semaphore_mem>> -> memref<1x!tpu.dma_semaphore, #tpu.memory_space<semaphore_mem>>
    %49 = tpu.memref_squeeze %48 : memref<1x!tpu.dma_semaphore, #tpu.memory_space<semaphore_mem>> -> memref<!tpu.dma_semaphore, #tpu.memory_space<semaphore_mem>>
    tpu.wait_dma2 semaphore(%49 : memref<!tpu.dma_semaphore, #tpu.memory_space<semaphore_mem>>) src(%46 : memref<1x32xf32, #tpu.memory_space<any>>) dst(%47 : memref<1x32xf32, #tpu.memory_space<vmem>>)
    %c2_34 = arith.constant 2 : index
    %50 = memref.load %arg0[%c2_34] : memref<8xi32, #tpu.memory_space<smem>>
    %c2_i32_35 = arith.constant 2 : i32
    %c0_i32_36 = arith.constant 0 : i32
    %51 = tpu.memref_slice %arg1[%50, %c0_i32_36] : memref<500x32xf32, #tpu.memory_space<any>> -> memref<1x32xf32, #tpu.memory_space<any>>
    %c2_i32_37 = arith.constant 2 : i32
    %c0_i32_38 = arith.constant 0 : i32
    %52 = tpu.memref_slice %arg8[%c2_i32_37, %c0_i32_38] : memref<8x32xf32, #tpu.memory_space<vmem>> -> memref<1x32xf32, #tpu.memory_space<vmem>>
    %53 = tpu.memref_slice %arg9[%c2_i32_35] : memref<8x!tpu.dma_semaphore, #tpu.memory_space<semaphore_mem>> -> memref<1x!tpu.dma_semaphore, #tpu.memory_space<semaphore_mem>>
    %54 = tpu.memref_squeeze %53 : memref<1x!tpu.dma_semaphore, #tpu.memory_space<semaphore_mem>> -> memref<!tpu.dma_semaphore, #tpu.memory_space<semaphore_mem>>
    tpu.wait_dma2 semaphore(%54 : memref<!tpu.dma_semaphore, #tpu.memory_space<semaphore_mem>>) src(%51 : memref<1x32xf32, #tpu.memory_space<any>>) dst(%52 : memref<1x32xf32, #tpu.memory_space<vmem>>)
    %c3_39 = arith.constant 3 : index
    %55 = memref.load %arg0[%c3_39] : memref<8xi32, #tpu.memory_space<smem>>
    %c3_i32_40 = arith.constant 3 : i32
    %c0_i32_41 = arith.constant 0 : i32
    %56 = tpu.memref_slice %arg1[%55, %c0_i32_41] : memref<500x32xf32, #tpu.memory_space<any>> -> memref<1x32xf32, #tpu.memory_space<any>>
    %c3_i32_42 = arith.constant 3 : i32
    %c0_i32_43 = arith.constant 0 : i32
    %57 = tpu.memref_slice %arg8[%c3_i32_42, %c0_i32_43] : memref<8x32xf32, #tpu.memory_space<vmem>> -> memref<1x32xf32, #tpu.memory_space<vmem>>
    %58 = tpu.memref_slice %arg9[%c3_i32_40] : memref<8x!tpu.dma_semaphore, #tpu.memory_space<semaphore_mem>> -> memref<1x!tpu.dma_semaphore, #tpu.memory_space<semaphore_mem>>
    %59 = tpu.memref_squeeze %58 : memref<1x!tpu.dma_semaphore, #tpu.memory_space<semaphore_mem>> -> memref<!tpu.dma_semaphore, #tpu.memory_space<semaphore_mem>>
    tpu.wait_dma2 semaphore(%59 : memref<!tpu.dma_semaphore, #tpu.memory_space<semaphore_mem>>) src(%56 : memref<1x32xf32, #tpu.memory_space<any>>) dst(%57 : memref<1x32xf32, #tpu.memory_space<vmem>>)
    %c4_44 = arith.constant 4 : index
    %60 = memref.load %arg0[%c4_44] : memref<8xi32, #tpu.memory_space<smem>>
    %c4_i32_45 = arith.constant 4 : i32
    %c0_i32_46 = arith.constant 0 : i32
    %61 = tpu.memref_slice %arg1[%60, %c0_i32_46] : memref<500x32xf32, #tpu.memory_space<any>> -> memref<1x32xf32, #tpu.memory_space<any>>
    %c4_i32_47 = arith.constant 4 : i32
    %c0_i32_48 = arith.constant 0 : i32
    %62 = tpu.memref_slice %arg8[%c4_i32_47, %c0_i32_48] : memref<8x32xf32, #tpu.memory_space<vmem>> -> memref<1x32xf32, #tpu.memory_space<vmem>>
    %63 = tpu.memref_slice %arg9[%c4_i32_45] : memref<8x!tpu.dma_semaphore, #tpu.memory_space<semaphore_mem>> -> memref<1x!tpu.dma_semaphore, #tpu.memory_space<semaphore_mem>>
    %64 = tpu.memref_squeeze %63 : memref<1x!tpu.dma_semaphore, #tpu.memory_space<semaphore_mem>> -> memref<!tpu.dma_semaphore, #tpu.memory_space<semaphore_mem>>
    tpu.wait_dma2 semaphore(%64 : memref<!tpu.dma_semaphore, #tpu.memory_space<semaphore_mem>>) src(%61 : memref<1x32xf32, #tpu.memory_space<any>>) dst(%62 : memref<1x32xf32, #tpu.memory_space<vmem>>)
    %c5_49 = arith.constant 5 : index
    %65 = memref.load %arg0[%c5_49] : memref<8xi32, #tpu.memory_space<smem>>
    %c5_i32_50 = arith.constant 5 : i32
    %c0_i32_51 = arith.constant 0 : i32
    %66 = tpu.memref_slice %arg1[%65, %c0_i32_51] : memref<500x32xf32, #tpu.memory_space<any>> -> memref<1x32xf32, #tpu.memory_space<any>>
    %c5_i32_52 = arith.constant 5 : i32
    %c0_i32_53 = arith.constant 0 : i32
    %67 = tpu.memref_slice %arg8[%c5_i32_52, %c0_i32_53] : memref<8x32xf32, #tpu.memory_space<vmem>> -> memref<1x32xf32, #tpu.memory_space<vmem>>
    %68 = tpu.memref_slice %arg9[%c5_i32_50] : memref<8x!tpu.dma_semaphore, #tpu.memory_space<semaphore_mem>> -> memref<1x!tpu.dma_semaphore, #tpu.memory_space<semaphore_mem>>
    %69 = tpu.memref_squeeze %68 : memref<1x!tpu.dma_semaphore, #tpu.memory_space<semaphore_mem>> -> memref<!tpu.dma_semaphore, #tpu.memory_space<semaphore_mem>>
    tpu.wait_dma2 semaphore(%69 : memref<!tpu.dma_semaphore, #tpu.memory_space<semaphore_mem>>) src(%66 : memref<1x32xf32, #tpu.memory_space<any>>) dst(%67 : memref<1x32xf32, #tpu.memory_space<vmem>>)
    %c6_54 = arith.constant 6 : index
    %70 = memref.load %arg0[%c6_54] : memref<8xi32, #tpu.memory_space<smem>>
    %c6_i32_55 = arith.constant 6 : i32
    %c0_i32_56 = arith.constant 0 : i32
    %71 = tpu.memref_slice %arg1[%70, %c0_i32_56] : memref<500x32xf32, #tpu.memory_space<any>> -> memref<1x32xf32, #tpu.memory_space<any>>
    %c6_i32_57 = arith.constant 6 : i32
    %c0_i32_58 = arith.constant 0 : i32
    %72 = tpu.memref_slice %arg8[%c6_i32_57, %c0_i32_58] : memref<8x32xf32, #tpu.memory_space<vmem>> -> memref<1x32xf32, #tpu.memory_space<vmem>>
    %73 = tpu.memref_slice %arg9[%c6_i32_55] : memref<8x!tpu.dma_semaphore, #tpu.memory_space<semaphore_mem>> -> memref<1x!tpu.dma_semaphore, #tpu.memory_space<semaphore_mem>>
    %74 = tpu.memref_squeeze %73 : memref<1x!tpu.dma_semaphore, #tpu.memory_space<semaphore_mem>> -> memref<!tpu.dma_semaphore, #tpu.memory_space<semaphore_mem>>
    tpu.wait_dma2 semaphore(%74 : memref<!tpu.dma_semaphore, #tpu.memory_space<semaphore_mem>>) src(%71 : memref<1x32xf32, #tpu.memory_space<any>>) dst(%72 : memref<1x32xf32, #tpu.memory_space<vmem>>)
    %c7_59 = arith.constant 7 : index
    %75 = memref.load %arg0[%c7_59] : memref<8xi32, #tpu.memory_space<smem>>
    %c7_i32_60 = arith.constant 7 : i32
    %c0_i32_61 = arith.constant 0 : i32
    %76 = tpu.memref_slice %arg1[%75, %c0_i32_61] : memref<500x32xf32, #tpu.memory_space<any>> -> memref<1x32xf32, #tpu.memory_space<any>>
    %c7_i32_62 = arith.constant 7 : i32
    %c0_i32_63 = arith.constant 0 : i32
    %77 = tpu.memref_slice %arg8[%c7_i32_62, %c0_i32_63] : memref<8x32xf32, #tpu.memory_space<vmem>> -> memref<1x32xf32, #tpu.memory_space<vmem>>
    %78 = tpu.memref_slice %arg9[%c7_i32_60] : memref<8x!tpu.dma_semaphore, #tpu.memory_space<semaphore_mem>> -> memref<1x!tpu.dma_semaphore, #tpu.memory_space<semaphore_mem>>
    %79 = tpu.memref_squeeze %78 : memref<1x!tpu.dma_semaphore, #tpu.memory_space<semaphore_mem>> -> memref<!tpu.dma_semaphore, #tpu.memory_space<semaphore_mem>>
    tpu.wait_dma2 semaphore(%79 : memref<!tpu.dma_semaphore, #tpu.memory_space<semaphore_mem>>) src(%76 : memref<1x32xf32, #tpu.memory_space<any>>) dst(%77 : memref<1x32xf32, #tpu.memory_space<vmem>>)
    %c0_64 = arith.constant 0 : index
    %c0_65 = arith.constant 0 : index
    %80 = vector.load %arg8[%c0_64, %c0_65] : memref<8x32xf32, #tpu.memory_space<vmem>>, vector<8x32xf32>
    %cst = arith.constant 0.000000e+00 : f32
    %81 = vector.broadcast %cst : f32 to vector<8x32xf32>
    %82 = arith.maximumf %80, %81 : vector<8x32xf32>
    %c0_66 = arith.constant 0 : index
    %c0_67 = arith.constant 0 : index
    %83 = vector.load %arg4[%c0_66, %c0_67] : memref<8x64xf32, #tpu.memory_space<vmem>>, vector<8x64xf32>
    %84 = tpu.concatenate %82, %83 in 1 : vector<8x32xf32>, vector<8x64xf32> -> vector<8x96xf32>
    %c0_68 = arith.constant 0 : index
    %c0_69 = arith.constant 0 : index
    %c0_70 = arith.constant 0 : index
    %85 = vector.load %arg2[%c0_68, %c0_69, %c0_70] : memref<4x96x64xf32, #tpu.memory_space<vmem>>, vector<1x96x64xf32>
    %86 = vector.shape_cast %85 : vector<1x96x64xf32> to vector<96x64xf32>
    %cst_71 = arith.constant dense<0.000000e+00> : vector<8x64xf32>
    %87 = tpu.matmul %84, %86, %cst_71 {dimension_numbers = #tpu.dot_dimension_numbers<[1], [0], [0], [1], [0, 0, 1, 1], [], []>} : vector<8x96xf32>, vector<96x64xf32>, vector<8x64xf32> -> vector<8x64xf32>
    %c0_72 = arith.constant 0 : index
    %c0_73 = arith.constant 0 : index
    %c0_74 = arith.constant 0 : index
    %88 = vector.load %arg3[%c0_72, %c0_73, %c0_74] : memref<4x1x64xf32, #tpu.memory_space<vmem>>, vector<1x1x64xf32>
    %89 = vector.shape_cast %88 : vector<1x1x64xf32> to vector<1x64xf32>
    %90 = vector.broadcast %89 : vector<1x64xf32> to vector<8x64xf32>
    %91 = arith.addf %87, %90 : vector<8x64xf32>
    %92 = arith.negf %91 : vector<8x64xf32>
    %93 = math.exp %92 : vector<8x64xf32>
    %cst_75 = arith.constant 1.000000e+00 : f32
    %94 = vector.broadcast %cst_75 : f32 to vector<8x64xf32>
    %95 = arith.addf %94, %93 : vector<8x64xf32>
    %96 = arith.divf %94, %95 : vector<8x64xf32>
    %c1_76 = arith.constant 1 : index
    %c0_77 = arith.constant 0 : index
    %c0_78 = arith.constant 0 : index
    %97 = vector.load %arg2[%c1_76, %c0_77, %c0_78] : memref<4x96x64xf32, #tpu.memory_space<vmem>>, vector<1x96x64xf32>
    %98 = vector.shape_cast %97 : vector<1x96x64xf32> to vector<96x64xf32>
    %cst_79 = arith.constant dense<0.000000e+00> : vector<8x64xf32>
    %99 = tpu.matmul %84, %98, %cst_79 {dimension_numbers = #tpu.dot_dimension_numbers<[1], [0], [0], [1], [0, 0, 1, 1], [], []>} : vector<8x96xf32>, vector<96x64xf32>, vector<8x64xf32> -> vector<8x64xf32>
    %c1_80 = arith.constant 1 : index
    %c0_81 = arith.constant 0 : index
    %c0_82 = arith.constant 0 : index
    %100 = vector.load %arg3[%c1_80, %c0_81, %c0_82] : memref<4x1x64xf32, #tpu.memory_space<vmem>>, vector<1x1x64xf32>
    %101 = vector.shape_cast %100 : vector<1x1x64xf32> to vector<1x64xf32>
    %102 = vector.broadcast %101 : vector<1x64xf32> to vector<8x64xf32>
    %103 = arith.addf %99, %102 : vector<8x64xf32>
    %104 = arith.negf %103 : vector<8x64xf32>
    %105 = math.exp %104 : vector<8x64xf32>
    %cst_83 = arith.constant 1.000000e+00 : f32
    %106 = vector.broadcast %cst_83 : f32 to vector<8x64xf32>
    %107 = arith.addf %106, %105 : vector<8x64xf32>
    %108 = arith.divf %106, %107 : vector<8x64xf32>
    %c2_84 = arith.constant 2 : index
    %c0_85 = arith.constant 0 : index
    %c0_86 = arith.constant 0 : index
    %109 = vector.load %arg2[%c2_84, %c0_85, %c0_86] : memref<4x96x64xf32, #tpu.memory_space<vmem>>, vector<1x96x64xf32>
    %110 = vector.shape_cast %109 : vector<1x96x64xf32> to vector<96x64xf32>
    %cst_87 = arith.constant dense<0.000000e+00> : vector<8x64xf32>
    %111 = tpu.matmul %84, %110, %cst_87 {dimension_numbers = #tpu.dot_dimension_numbers<[1], [0], [0], [1], [0, 0, 1, 1], [], []>} : vector<8x96xf32>, vector<96x64xf32>, vector<8x64xf32> -> vector<8x64xf32>
    %c2_88 = arith.constant 2 : index
    %c0_89 = arith.constant 0 : index
    %c0_90 = arith.constant 0 : index
    %112 = vector.load %arg3[%c2_88, %c0_89, %c0_90] : memref<4x1x64xf32, #tpu.memory_space<vmem>>, vector<1x1x64xf32>
    %113 = vector.shape_cast %112 : vector<1x1x64xf32> to vector<1x64xf32>
    %114 = vector.broadcast %113 : vector<1x64xf32> to vector<8x64xf32>
    %115 = arith.addf %111, %114 : vector<8x64xf32>
    %116 = math.tanh %115 : vector<8x64xf32>
    %c3_91 = arith.constant 3 : index
    %c0_92 = arith.constant 0 : index
    %c0_93 = arith.constant 0 : index
    %117 = vector.load %arg2[%c3_91, %c0_92, %c0_93] : memref<4x96x64xf32, #tpu.memory_space<vmem>>, vector<1x96x64xf32>
    %118 = vector.shape_cast %117 : vector<1x96x64xf32> to vector<96x64xf32>
    %cst_94 = arith.constant dense<0.000000e+00> : vector<8x64xf32>
    %119 = tpu.matmul %84, %118, %cst_94 {dimension_numbers = #tpu.dot_dimension_numbers<[1], [0], [0], [1], [0, 0, 1, 1], [], []>} : vector<8x96xf32>, vector<96x64xf32>, vector<8x64xf32> -> vector<8x64xf32>
    %c3_95 = arith.constant 3 : index
    %c0_96 = arith.constant 0 : index
    %c0_97 = arith.constant 0 : index
    %120 = vector.load %arg3[%c3_95, %c0_96, %c0_97] : memref<4x1x64xf32, #tpu.memory_space<vmem>>, vector<1x1x64xf32>
    %121 = vector.shape_cast %120 : vector<1x1x64xf32> to vector<1x64xf32>
    %122 = vector.broadcast %121 : vector<1x64xf32> to vector<8x64xf32>
    %123 = arith.addf %119, %122 : vector<8x64xf32>
    %124 = arith.negf %123 : vector<8x64xf32>
    %125 = math.exp %124 : vector<8x64xf32>
    %cst_98 = arith.constant 1.000000e+00 : f32
    %126 = vector.broadcast %cst_98 : f32 to vector<8x64xf32>
    %127 = arith.addf %126, %125 : vector<8x64xf32>
    %128 = arith.divf %126, %127 : vector<8x64xf32>
    %c0_99 = arith.constant 0 : index
    %c0_100 = arith.constant 0 : index
    %129 = vector.load %arg5[%c0_99, %c0_100] : memref<8x64xf32, #tpu.memory_space<vmem>>, vector<8x64xf32>
    %130 = arith.mulf %108, %129 : vector<8x64xf32>
    %131 = arith.mulf %96, %116 : vector<8x64xf32>
    %132 = arith.addf %130, %131 : vector<8x64xf32>
    %133 = math.tanh %132 : vector<8x64xf32>
    %134 = arith.mulf %128, %133 : vector<8x64xf32>
    %c0_101 = arith.constant 0 : index
    %c0_102 = arith.constant 0 : index
    %135 = vector.load %arg6[%c0_101, %c0_102] : memref<8x64xf32, #tpu.memory_space<vmem>>, vector<8x64xf32>
    tpu.vector_store %arg6[%c0_101, %c0_102], %134 {strides = array<i32>} : memref<8x64xf32, #tpu.memory_space<vmem>>, vector<8x64xf32>,
    %c0_103 = arith.constant 0 : index
    %c0_104 = arith.constant 0 : index
    %136 = vector.load %arg7[%c0_103, %c0_104] : memref<8x64xf32, #tpu.memory_space<vmem>>, vector<8x64xf32>
    tpu.vector_store %arg7[%c0_103, %c0_104], %132 {strides = array<i32>} : memref<8x64xf32, #tpu.memory_space<vmem>>, vector<8x64xf32>,
    return
  }
}

</mosaic_0001>

<bundles_post_ra>
// kernel: step.3
= control target key start
LH: loop header
LB: loop body
LE: loop exit
PB: predicated region body
PF: predicated region fallthrough
CT: control target
= control target key end

     0   :  { %8 = vsyncpa [#allocation4], 0  ;;  %s731_s0 = inlined_call_operand.vmem [shape: f32[8,64], index: 0, kind: input, shape index: {}]   ;;  %s732_s1 = inlined_call_operand.vmem [shape: bf16[64,512], index: 1, kind: input, shape index: {}]   ;;  %s733_s2 = inlined_call_operand.vmem [shape: f32[1,512], index: 2, kind: input, shape index: {}]   ;;  %s734_s3 = inlined_call_operand.hbm [shape: f32[8,512], index: 3, kind: output, shape index: {}]  }
   0x1   :  { %10 = vsyncpa [#allocation4 + $0x1], 0  ;;  %s615_s12 = smov 0   ;;  %s617_s13 = smov 0  }
   0x2   :  { %s619_s14 = smov 0   ;;  %s621_s15 = smov 0  }
   0x3 LB: > { %s636_s16 = sadd.s32 4294967295, %s591_s15   ;;  %s453_s17 = sadd.s32 4294967294, %s591_s15   ;;  %s591_s15 = sphi %s621_s15, %s740_s15   ;;  %s587_s14 = sphi %s619_s14, %s739_s14   ;;  %s583_s13 = sphi %s617_s13, %s738_s13   ;;  %s579_s12 = sphi %s615_s12, %s737_s12  }
   0x4   : > { %s640_s18 = sadd.s32 1, %s591_s15   ;;  %s44_s19 = sadd.s32 1, %s587_s14 }
   0x5   : > { %s41_s20 = ssub.s32 %s591_s15, %s640_s18  ;;  %p51_p0 = scmp.ne.s32.totalorder %s587_s14, %s583_s13 }
   0x6   : > { %p42_p1 = scmp.eq.s32.totalorder %s41_s20, 0  ;;  %p52_p2 = scmp.eq.s32.totalorder %s591_s15, 0 }
   0x7   : > { %p107_p3 = scmp.eq.s32.totalorder %s636_s16, 1  ;;  %p112_p4 = scmp.ne.s32.totalorder %s583_s13, %s579_s12 }
   0x8   : > { %s652_s21 = scalar_select %p42_p1, %s587_s14, %s44_s19  }
   0x9   : > { %p53_p5 = por %p52_p2, %p51_p0  ;;  %p654_p6 = por %p107_p3, %p51_p0 }
   0xa   : > { %p113_p7 = scmp.eq.s32.totalorder %s453_s17, 1  ;;  %p455_p9 = scmp.ge.s32.totalorder %s591_s15, 2 }
   0xc   : > { %p658_p8 = por %p113_p7, %p112_p4  ;;  %132 = sbr.rel (%p455_p9) target bundleno = 25 (0x19), region = 20 }
  0x11   : > { %135 = sbr.rel (!%p53_p5) target bundleno = 25 (0x19), region = 24  ;;  %s137_s24 = sand.u32 (%p53_p5), 1, %s587_s14  }
  0x12   : > { %s477_s25 = sshll.u32 (%p53_p5), %s591_s15, 3  ;;  %s456_s26 = sshll.u32 (%p53_p5), %s137_s24, 6 }
  0x13   : > { %s142_s29 = scalar_lea.vmem (%p53_p5), %s732_s1, %s477_s25  ;;  %s139_s30 = scalar_lea.vmem (%p53_p5), [#allocation2], %s456_s26 }
  0x14   : > { %v185_v0 = vld [vmem:[%s142_s29] sm:$0xff] (%p53_p5)  ;;  %v187_v1 = vld [vmem:[%s142_s29 + $0x10] sm:$0xff] (%p53_p5) }
  0x15   : > { %v189_v2 = vld [vmem:[%s142_s29 + $0x20] sm:$0xff] (%p53_p5)  ;;  %186 = vst [vmem:[%s139_s30] sm:$0xff] (%p53_p5), %v185_v0  ;;  %188 = vst [vmem:[%s139_s30 + $0x8] sm:$0xff] (%p53_p5), %v187_v1  ;;  %v191_v3 = vld [vmem:[%s142_s29 + $0x30] sm:$0xff] (%p53_p5) }
  0x16   : > { %190 = vst [vmem:[%s139_s30 + $0x10] sm:$0xff] %v189_v2  ;;  %v193_v4 = vld [vmem:[%s142_s29 + $0x40] sm:$0xff]  ;;  %v195_v5 = vld [vmem:[%s142_s29 + $0x50] sm:$0xff]  ;;  %192 = vst [vmem:[%s139_s30 + $0x18] sm:$0xff] %v191_v3 }
  0x17   : > { %194 = vst [vmem:[%s139_s30 + $0x20] sm:$0xff] %v193_v4  ;;  %196 = vst [vmem:[%s139_s30 + $0x28] sm:$0xff] %v195_v5  ;;  %v197_v6 = vld [vmem:[%s142_s29 + $0x60] sm:$0xff]  ;;  %v199_v7 = vld [vmem:[%s142_s29 + $0x70] sm:$0xff] }
  0x18   : > { %198 = vst [vmem:[%s139_s30 + $0x30] sm:$0xff] %v197_v6  ;;  %200 = vst [vmem:[%s139_s30 + $0x38] sm:$0xff] %v199_v7 }
  0x19 PF: > { %p459_p10 = scmp.ge.s32.totalorder %s591_s15, 1  ;;  %p213_p11 = scmp.lt.s32.totalorder %s591_s15, 3 }
  0x1b   : > { %p214_p12 = pnand %p459_p10, %p213_p11 }
  0x1c   : > { %s673_s4 = sand.u32 (!%p214_p12), 1, %s583_s13   ;;  %s462_s9 = sshll.u32 (!%p214_p12), %s636_s16, 1 }
  0x1d   : > { %217 = sbr.rel (%p214_p12) target bundleno = 262 (0x106), region = 66  ;;  %s460_s5 = sshll.u32 (!%p214_p12), %s673_s4, 6 }
  0x1e   : > { %s222_s6 = scalar_lea.vmem (!%p214_p12), [#allocation2], %s460_s5  ;;  %p249_p13 = scmp.lt.s32.totalorder (!%p214_p12), %s462_s9, 3 }
  0x1f   : > { %s461_s19 = sshll.u32 (!%p214_p12), %s673_s4, 4  ;;  %s478_s20 = sshll.u32 (!%p214_p12), %s636_s16, 8 }
  0x20   : > { %s246_s24 = scalar_lea.vmem (!%p214_p12), [#allocation3], %s461_s19  ;;  %s688_s28 = scalar_lea.hbm (!%p214_p12), %s734_s3, %s478_s20 }
  0x21   : > { %s379_s25 = sshll.u32 (!%p214_p12), %s246_s24, 4  ;;  %s365_s16 = scalar_lea.sflag (!%p214_p12), [#allocation4], %s673_s4  ;;  %s690_s25 = int_to_ptr.vmem [resolvable:$true] %s379_s25 }
  0x22   : > { %v593_v8 = vmov 0   ;;  %v519_v9 = vld [vmem:[%s222_s6 + $0x34] ss:$8 sps:$4 sm:$0xff]   ;;  %v521_v10 = vld [vmem:[%s222_s6 + $0x30] ss:$8 sps:$4 sm:$0xff]   ;;  %v255_v17 = vld [vmem:[%s731_s0] sm:$0xff]  ;;  %v267_v19 = vlaneseq }
  0x23   : > { %353 = vmatprep.mubr.bf16.mxu0 %v593_v8  ;;  %329 = vmatprep.subr.bf16.mxu0 %v519_v9  ;;  %v522_v11 = vld [vmem:[%s222_s6 + $0x24] ss:$8 sps:$4 sm:$0xff]   ;;  %v524_v12 = vld [vmem:[%s222_s6 + $0x20] ss:$8 sps:$4 sm:$0xff]   ;;  %v525_v13 = vld [vmem:[%s222_s6 + $0x14] ss:$8 sps:$4 sm:$0xff]   ;;  %v256_v18 = vpack.c.bf16 %v255_v17, %v255_v17 }
  0x24   : > { %330 = vmatpush1.bf16.msra.mxu0 %v521_v10  ;;  %v527_v14 = vld [vmem:[%s222_s6 + $0x10] ss:$8 sps:$4 sm:$0xff]   ;;  %v528_v15 = vld [vmem:[%s222_s6 + $0x4] ss:$8 sps:$4 sm:$0xff]   ;;  %v530_v16 = vld [vmem:[%s222_s6] ss:$8 sps:$4 sm:$0xff]  }
  0x25   : > { %331 = vmatprep.subr.bf16.mxu0 %v522_v11  ;;  %vm317_vm0 = vcmask 523264   ;;  %s742_s9 = smov (!%p249_p13, %s462_s9), 3  ;;  %v268_v20 = vshrl.u32 %v267_v19, 7  ;;  %s531_s29 = scalar_lea.vmem %s690_s25, 256 }
  0x26   : > { %s251_s17 = scalar_lea.vmem %s733_s2, %s742_s9  ;;  %p532_p0 = scmp.ne.s32.totalorder %s690_s25, %s531_s29 }
  0x27   : > { %v269_v21 = vsub.s32 0, %v268_v20  ;;  %v265_v22 = vld [vmem:[%s251_s17] sm:$0x3]  ;;  %v273_v23 = vsub.s32 1, %v268_v20  ;;  %s594_s30 = smov [#allocation3]  }
  0x28   : > { %332 = vmatpush1.bf16.msra.mxu0 %v524_v12  ;;  %p533_p1 = pnand %p532_p0, %p654_p6  ;;  %s535_s5 = sshll.u32 %s594_s30, 4  ;;  %s536_s5 = int_to_ptr.vmem [resolvable:$false] %s535_s5 }
  0x29   : > { %333 = vmatprep.subr.bf16.mxu0 %v525_v13  ;;  %v270_v24 = vrot.slane %v265_v22, %v269_v21  ;;  %v274_v25 = vrot.slane %v265_v22, %v273_v23  ;;  %s537_s6 = scalar_lea.vmem %s536_s5, 512  ;;  %p538_p3 = scmp.lt.s32.totalorder %s690_s25, %s536_s5 }
  0x2a   : > { %p534_p2 = pneg %p533_p1  ;;  %p539_p4 = scmp.lt.s32.totalorder %s537_s6, %s531_s29 }
  0x2c   : > { %334 = vmatpush1.bf16.msra.mxu0 %v527_v14  ;;  %p540_p5 = por %p539_p4, %p538_p3 }
  0x2d   : > { %335 = vmatprep.subr.bf16.mxu0 %v528_v15 }
  0x2e   : > { %p541_p7 = pnand %p540_p5, %p534_p2 }
  0x30   : > { %336 = vmatpush1.bf16.msra.mxu0 %v530_v16 }
  0x33   : > { %471 = vmatmul.mubr.msk.bf16.vlgmr.msra.gmra.mxu0 %vm317_vm0, %v256_v18 }
  0xf3   : > { %v355_v26 = vpop.f32.mrf.mxu0 }
  0xf4   : > { %v356_v27 = vadd.f32 %v355_v26, %v270_v24 }
  0xf5   : > { %v357_v28 = vpop.f32.mrf.mxu0 }
  0xf6   : > { %362 = vst [vmem:[%s246_s24] sm:$0xff] %v356_v27  ;;  %v358_v29 = vadd.f32 %v357_v28, %v274_v25 }
  0xf7   : > { %v359_v30 = vpop.f32.mrf.mxu0 }
  0xf8   : > { %363 = vst [vmem:[%s246_s24 + $0x8] sm:$0xff] %v358_v29 }
  0xf9   : > { %v360_v31 = vpop.f32.mrf.mxu0 }
  0xfa   : > { %544 = shalt.err (!%p541_p7)
}
  0xfb   : > { %s545_s7 = scalar_lea.hbm %s688_s28, 256  ;;  %s549_s9 = scalar_lea.hbm %s734_s3, 512 }
  0xfc   : > { %p546_p10 = scmp.ne.s32.totalorder %s688_s28, %s545_s7  ;;  %p550_p13 = scmp.lt.s32.totalorder %s688_s28, %s734_s3 }
  0xfd   : > { %p551_p0 = scmp.lt.s32.totalorder %s549_s9, %s545_s7 }
  0xfe   : > { %p547_p11 = pnand %p546_p10, %p654_p6 }
  0xff   : > { %p552_p1 = por %p551_p0, %p550_p13 }
 0x100   : > { %p548_p12 = pneg %p547_p11 }
 0x102   : > { %p553_p2 = pnand %p552_p1, %p548_p12 }
 0x104   : > { %556 = shalt.err (!%p553_p2)
}
 0x105   : > { %479 = dma.vmem_to_hbm [thread:$0]  (%p654_p6), %s690_s25, 256, %s688_s28, %s365_s16  }
 0x106 PF: > { %s391_s17 = sand.u32 1, %s579_s12   ;;  %p482_p3 = pnand %p455_p9, %p658_p8 }
 0x107   : > { %s392_s19 = scalar_lea.sflag [#allocation4], %s391_s17 }
 0x108   : > { %p483_p4 = pneg %p482_p3 }
 0x10a   : > { %574 = dma.done.wait (%p483_p4), %s392_s19, 256  }
 0x10b   : > { %576 = vsyncadd (%p483_p4), %s392_s19, 4294967040  ;;  %p13_p5 = scmp.ge.s32.totalorder %s640_s18, 4   ;;  %s737_s12 = smov %s583_s13 }
 0x10c   : > { %s738_s13 = smov %s587_s14  ;;  %s739_s14 = smov %s652_s21 }
 0x10d   : > { %s740_s15 = smov %s640_s18  ;;  %15 = sbr.rel (!%p13_p5) target bundleno = 3 (0x3), region = 113 }
 0x112   :  { %397 = vsyncpa [#allocation4], 1 }
 0x113   :  { %399 = vsyncpa [#allocation4 + $0x1], 1 }

// kernel: step.2
= control target key start
LH: loop header
LB: loop body
LE: loop exit
PB: predicated region body
PF: predicated region fallthrough
CT: control target
= control target key end

     0   :  { %13 = vsyncpa [#allocation6], 0  ;;  %s1414_s0 = inlined_call_operand.vmem [shape: s32[8], index: 0, kind: input, shape index: {}]   ;;  %s1415_s1 = inlined_call_operand.hbm [shape: f32[500,32], index: 1, kind: input, shape index: {}]   ;;  %s1416_s2 = inlined_call_operand.hbm [shape: f32[4,96,64], index: 2, kind: input, shape index: {}]   ;;  %s1417_s3 = inlined_call_operand.vmem [shape: f32[4,1,64], index: 3, kind: input, shape index: {}]   ;;  %s1418_s4 = inlined_call_operand.vmem [shape: f32[8,64], index: 4, kind: input, shape index: {}, may-alias: {4,6}]   ;;  %s1419_s5 = inlined_call_operand.vmem [shape: f32[8,64], index: 5, kind: input, shape index: {}, may-alias: {5,7}]   ;;  %s1420_s6 = inlined_call_operand.vmem [shape: f32[8,64], index: 6, kind: output, shape index: {0}, may-alias: {4,6}]   ;;  %s1421_s7 = inlined_call_operand.vmem [shape: f32[8,64], index: 7, kind: output, shape index: {1}, may-alias: {5,7}]  }
   0x1   :  { %s21_s26 = sshll.u32 %s1414_s0, 4  ;;  %s22_s26 = int_to_ptr.vmem [resolvable:$true] %s21_s26 }
   0x2   :  { %14 = vsyncpa [#allocation5], 0  ;;  %s913_s27 = scalar_lea.vmem %s22_s26, 16  ;;  %p918_p1 = scmp.lt.s32.totalorder %s22_s26, %s22_s26 }
   0x3   :  { %p914_p0 = scmp.ne.s32.totalorder %s22_s26, %s913_s27  ;;  %p919_p2 = scmp.lt.s32.totalorder %s913_s27, %s913_s27 }
   0x5   :  { %p920_p3 = por %p919_p2, %p918_p1 }
   0x7   :  { %p921_p4 = pnand %p920_p3, %p914_p0 }
   0x9   :  { %924 = shalt.err (!%p921_p4)
}
   0xa   :  { %s1141_s28 = smov [#allocation4]   ;;  %s1142_s29 = smov [#allocation7]  }
   0xb   :  { %24 = dma.vmem_to_smem %s22_s26, 16, %s1141_s28, [#allocation6]  }
   0xc   :  { %s30_s30 = sshll.u32 %s1142_s29, 4  ;;  %s31_s30 = int_to_ptr.vmem [resolvable:$true] %s30_s30 }
   0xd   :  { %s933_s8 = scalar_lea.vmem %s31_s30, 6144  ;;  %p938_p6 = scmp.lt.s32.totalorder %s31_s30, %s31_s30 }
   0xe   :  { %p934_p5 = scmp.ne.s32.totalorder %s31_s30, %s933_s8  ;;  %p939_p7 = scmp.lt.s32.totalorder %s933_s8, %s933_s8 }
  0x10   :  { %p940_p8 = por %p939_p7, %p938_p6 }
  0x12   :  { %p941_p9 = pnand %p940_p8, %p934_p5 }
  0x14   :  { %944 = shalt.err (!%p941_p9)
}
  0x15   :  { %s1143_s0 = smov 128   ;;  %s1144_s9 = smov 8  }
  0x16   :  { %36 = dma.hbm_to_vmem [thread:$0]  %s1416_s2, 6144, %s31_s30, [#allocation5], %s1143_s0, %s1143_s0, %s1144_s9  }
  0x17   :  { %1121 = dma.done.wait [#allocation6], 16  }
  0x18   :  { %1122 = vsyncadd [#allocation6], 4294967280 }
  0x19   :  { %1123 = dma.done.wait [#allocation5], 6144  }
  0x1a   :  { %1124 = vsyncadd [#allocation5], 4294961152 }
  0x1b   :  { %49 = sfence }
  0x1c   :  { %s50_s12 = sld [smem:[#allocation4]]  ;;  %s1145_s13 = smov [#allocation2]  }
  0x1d   :  { %s60_s14 = sshll.u32 %s1145_s13, 4  ;;  %s1202_s15 = sld [smem:[#allocation4 + $0x1]]  ;;  %s1204_s14 = int_to_ptr.vmem [resolvable:$true] %s60_s14 }
  0x1e   :  { %s1146_s16 = smov [#allocation2 + $0x1]   ;;  %s1206_s18 = sld [smem:[#allocation4 + $0x2]] }
  0x1f   :  { %s76_s17 = sshll.u32 %s1146_s16, 4  ;;  %s1147_s2 = smov [#allocation2 + $0x2]   ;;  %s1208_s17 = int_to_ptr.vmem [resolvable:$true] %s76_s17 }
  0x20   :  { %s92_s19 = sshll.u32 %s1147_s2, 4  ;;  %s1210_s20 = sld [smem:[#allocation4 + $0x3]]  ;;  %s1212_s19 = int_to_ptr.vmem [resolvable:$true] %s92_s19 }
  0x21   :  { %s1221_s29 = scalar_lea.hbm %s1415_s1, 8064 }
  0x22   :  { %s685_s21 = sshll.u32 %s50_s12, 4 }
  0x23   :  { %s52_s24 = scalar_lea.hbm %s1415_s1, %s685_s21  ;;  %s687_s25 = sshll.u32 %s1202_s15, 4 }
  0x24   :  { %s945_s26 = scalar_lea.hbm %s52_s24, 16  ;;  %p948_p11 = scmp.lt.s32.totalorder %s52_s24, %s1415_s1 }
  0x25   :  { %p946_p10 = scmp.ne.s32.totalorder %s52_s24, %s945_s26  ;;  %p949_p12 = scmp.lt.s32.totalorder %s1221_s29, %s945_s26 }
  0x27   :  { %p950_p13 = por %p949_p12, %p948_p11 }
  0x29   :  { %p951_p0 = pnand %p950_p13, %p946_p10 }
  0x2b   :  { %954 = shalt.err (!%p951_p0)  }
  0x2c   :  { %s955_s0 = scalar_lea.vmem %s1204_s14, 16  ;;  %s1230_s9 = scalar_lea.vmem %s1204_s14, 128 }
  0x2d   :  { %p956_p1 = scmp.ne.s32.totalorder %s1204_s14, %s955_s0  ;;  %p960_p2 = scmp.lt.s32.totalorder %s1204_s14, %s1204_s14 }
  0x2e   :  { %p961_p3 = scmp.lt.s32.totalorder %s1230_s9, %s955_s0 }
  0x30   :  { %p962_p4 = por %p961_p3, %p960_p2 }
  0x32   :  { %p963_p5 = pnand %p962_p4, %p956_p1 }
  0x34   :  { %966 = shalt.err (!%p963_p5)  }
  0x35   :  { %63 = dma.hbm_to_vmem [thread:$0]  %s52_s24, 16, %s1204_s14, [#allocation3] }
  0x36   :  { %s66_s12 = scalar_lea.hbm %s1415_s1, %s687_s25  ;;  %s689_s13 = sshll.u32 %s1206_s18, 4 }
  0x37   :  { %s967_s15 = scalar_lea.hbm %s66_s12, 16  ;;  %p970_p7 = scmp.lt.s32.totalorder %s66_s12, %s1415_s1 }
  0x38   :  { %p968_p6 = scmp.ne.s32.totalorder %s66_s12, %s967_s15  ;;  %p971_p8 = scmp.lt.s32.totalorder %s1221_s29, %s967_s15 }
  0x3a   :  { %p972_p9 = por %p971_p8, %p970_p7 }
  0x3c   :  { %p973_p10 = pnand %p972_p9, %p968_p6 }
  0x3e   :  { %976 = shalt.err (!%p973_p10)  }
  0x3f   :  { %s977_s21 = scalar_lea.vmem %s1208_s17, 16  ;;  %p982_p12 = scmp.lt.s32.totalorder %s1208_s17, %s1204_s14 }
  0x40   :  { %p978_p11 = scmp.ne.s32.totalorder %s1208_s17, %s977_s21  ;;  %p983_p13 = scmp.lt.s32.totalorder %s1230_s9, %s977_s21 }
  0x42   :  { %p984_p0 = por %p983_p13, %p982_p12 }
  0x44   :  { %p985_p1 = pnand %p984_p0, %p978_p11 }
  0x46   :  { %988 = shalt.err (!%p985_p1)  }
  0x47   :  { %79 = dma.hbm_to_vmem [thread:$0]  %s66_s12, 16, %s1208_s17, [#allocation3 + $0x1] }
  0x48   :  { %s82_s23 = scalar_lea.hbm %s1415_s1, %s689_s13  ;;  %s691_s24 = sshll.u32 %s1210_s20, 4 }
  0x49   :  { %s989_s25 = scalar_lea.hbm %s82_s23, 16  ;;  %p992_p3 = scmp.lt.s32.totalorder %s82_s23, %s1415_s1 }
  0x4a   :  { %p990_p2 = scmp.ne.s32.totalorder %s82_s23, %s989_s25  ;;  %p993_p4 = scmp.lt.s32.totalorder %s1221_s29, %s989_s25 }
  0x4c   :  { %p994_p5 = por %p993_p4, %p992_p3 }
  0x4e   :  { %p995_p6 = pnand %p994_p5, %p990_p2 }
  0x50   :  { %998 = shalt.err (!%p995_p6)  }
  0x51   :  { %s999_s17 = scalar_lea.vmem %s1212_s19, 16  ;;  %p1004_p8 = scmp.lt.s32.totalorder %s1212_s19, %s1204_s14 }
  0x52   :  { %p1000_p7 = scmp.ne.s32.totalorder %s1212_s19, %s999_s17  ;;  %p1005_p9 = scmp.lt.s32.totalorder %s1230_s9, %s999_s17 }
  0x54   :  { %p1006_p10 = por %p1005_p9, %p1004_p8 }
  0x56   :  { %p1007_p11 = pnand %p1006_p10, %p1000_p7 }
  0x58   :  { %1010 = shalt.err (!%p1007_p11)  }
  0x59   :  { %95 = dma.hbm_to_vmem [thread:$0]  %s82_s23, 16, %s1212_s19, [#allocation3 + $0x2] }
  0x5a   :  { %s98_s30 = scalar_lea.hbm %s1415_s1, %s691_s24  ;;  %s1148_s8 = smov [#allocation2 + $0x3]  }
  0x5b   :  { %s108_s0 = sshll.u32 %s1148_s8, 4  ;;  %s692_s10 = sld [smem:[#allocation4 + $0x4]]  ;;  %s109_s0 = int_to_ptr.vmem [resolvable:$true] %s108_s0 }
  0x5c   :  { %s1011_s11 = scalar_lea.hbm %s98_s30, 16  ;;  %p1014_p13 = scmp.lt.s32.totalorder %s98_s30, %s1415_s1 }
  0x5d   :  { %p1012_p12 = scmp.ne.s32.totalorder %s98_s30, %s1011_s11  ;;  %p1015_p0 = scmp.lt.s32.totalorder %s1221_s29, %s1011_s11 }
  0x5f   :  { %p1016_p1 = por %p1015_p0, %p1014_p13 }
  0x61   :  { %p1017_p2 = pnand %p1016_p1, %p1012_p12 }
  0x63   :  { %1020 = shalt.err (!%p1017_p2)  }
  0x64   :  { %s1021_s15 = scalar_lea.vmem %s109_s0, 16  ;;  %p1026_p4 = scmp.lt.s32.totalorder %s109_s0, %s1204_s14 }
  0x65   :  { %p1022_p3 = scmp.ne.s32.totalorder %s109_s0, %s1021_s15  ;;  %p1027_p5 = scmp.lt.s32.totalorder %s1230_s9, %s1021_s15 }
  0x67   :  { %p1028_p6 = por %p1027_p5, %p1026_p4 }
  0x69   :  { %p1029_p7 = pnand %p1028_p6, %p1022_p3 }
  0x6b   :  { %1032 = shalt.err (!%p1029_p7)  }
  0x6c   :  { %111 = dma.hbm_to_vmem [thread:$0]  %s98_s30, 16, %s109_s0, [#allocation3 + $0x3] }
  0x6d   :  { %s1149_s19 = smov [#allocation2 + $0x4]   ;;  %s694_s2 = sld [smem:[#allocation4 + $0x5]] }
  0x6e   :  { %s124_s16 = sshll.u32 %s1149_s19, 4  ;;  %s1150_s21 = smov [#allocation2 + $0x5]   ;;  %s125_s16 = int_to_ptr.vmem [resolvable:$true] %s124_s16 }
  0x6f   :  { %s140_s18 = sshll.u32 %s1150_s21, 4  ;;  %s1273_s22 = sld [smem:[#allocation4 + $0x6]]  ;;  %s1275_s18 = int_to_ptr.vmem [resolvable:$true] %s140_s18 }
  0x70   :  { %s693_s23 = sshll.u32 %s692_s10, 4 }
  0x71   :  { %s114_s26 = scalar_lea.hbm %s1415_s1, %s693_s23 }
  0x72   :  { %s1033_s27 = scalar_lea.hbm %s114_s26, 16  ;;  %p1036_p9 = scmp.lt.s32.totalorder %s114_s26, %s1415_s1 }
  0x73   :  { %p1034_p8 = scmp.ne.s32.totalorder %s114_s26, %s1033_s27  ;;  %p1037_p10 = scmp.lt.s32.totalorder %s1221_s29, %s1033_s27 }
  0x75   :  { %p1038_p11 = por %p1037_p10, %p1036_p9 }
  0x77   :  { %p1039_p12 = pnand %p1038_p11, %p1034_p8 }
  0x79   :  { %1042 = shalt.err (!%p1039_p12)  }
  0x7a   :  { %s1043_s28 = scalar_lea.vmem %s125_s16, 16  ;;  %p1048_p0 = scmp.lt.s32.totalorder %s125_s16, %s1204_s14 }
  0x7b   :  { %p1044_p13 = scmp.ne.s32.totalorder %s125_s16, %s1043_s28  ;;  %p1049_p1 = scmp.lt.s32.totalorder %s1230_s9, %s1043_s28 }
  0x7d   :  { %p1050_p2 = por %p1049_p1, %p1048_p0 }
  0x7f   :  { %p1051_p3 = pnand %p1050_p2, %p1044_p13 }
  0x81   :  { %1054 = shalt.err (!%p1051_p3)  }
  0x82   :  { %127 = dma.hbm_to_vmem [thread:$0]  %s114_s26, 16, %s125_s16, [#allocation3 + $0x4] }
  0x83   :  { %s695_s30 = sshll.u32 %s694_s2, 4  ;;  %s1151_s8 = smov [#allocation2 + $0x6]  }
  0x84   :  { %s156_s0 = sshll.u32 %s1151_s8, 4  ;;  %s130_s12 = scalar_lea.hbm %s1415_s1, %s695_s30  ;;  %s1289_s0 = int_to_ptr.vmem [resolvable:$true] %s156_s0 }
  0x85   :  { %s1055_s13 = scalar_lea.hbm %s130_s12, 16  ;;  %p1058_p5 = scmp.lt.s32.totalorder %s130_s12, %s1415_s1 }
  0x86   :  { %p1056_p4 = scmp.ne.s32.totalorder %s130_s12, %s1055_s13  ;;  %p1059_p6 = scmp.lt.s32.totalorder %s1221_s29, %s1055_s13 }
  0x88   :  { %p1060_p7 = por %p1059_p6, %p1058_p5 }
  0x8a   :  { %p1061_p8 = pnand %p1060_p7, %p1056_p4 }
  0x8c   :  { %1064 = shalt.err (!%p1061_p8)  }
  0x8d   :  { %s1065_s16 = scalar_lea.vmem %s1275_s18, 16  ;;  %p1070_p10 = scmp.lt.s32.totalorder %s1275_s18, %s1204_s14 }
  0x8e   :  { %p1066_p9 = scmp.ne.s32.totalorder %s1275_s18, %s1065_s16  ;;  %p1071_p11 = scmp.lt.s32.totalorder %s1230_s9, %s1065_s16 }
  0x90   :  { %p1072_p12 = por %p1071_p11, %p1070_p10 }
  0x92   :  { %p1073_p13 = pnand %p1072_p12, %p1066_p9 }
  0x94   :  { %1076 = shalt.err (!%p1073_p13)  }
  0x95   :  { %143 = dma.hbm_to_vmem [thread:$0]  %s130_s12, 16, %s1275_s18, [#allocation3 + $0x5] }
  0x96   :  { %s697_s2 = sshll.u32 %s1273_s22, 4  ;;  %s698_s21 = sld [smem:[#allocation4 + $0x7]] }
  0x97   :  { %s146_s25 = scalar_lea.hbm %s1415_s1, %s697_s2 }
  0x98   :  { %s1077_s26 = scalar_lea.hbm %s146_s25, 16  ;;  %p1080_p1 = scmp.lt.s32.totalorder %s146_s25, %s1415_s1 }
  0x99   :  { %p1078_p0 = scmp.ne.s32.totalorder %s146_s25, %s1077_s26  ;;  %p1081_p2 = scmp.lt.s32.totalorder %s1221_s29, %s1077_s26 }
  0x9b   :  { %p1082_p3 = por %p1081_p2, %p1080_p1 }
  0x9d   :  { %p1083_p4 = pnand %p1082_p3, %p1078_p0 }
  0x9f   :  { %1086 = shalt.err (!%p1083_p4)  }
  0xa0   :  { %s1087_s18 = scalar_lea.vmem %s1289_s0, 16  ;;  %p1092_p6 = scmp.lt.s32.totalorder %s1289_s0, %s1204_s14 }
  0xa1   :  { %p1088_p5 = scmp.ne.s32.totalorder %s1289_s0, %s1087_s18  ;;  %p1093_p7 = scmp.lt.s32.totalorder %s1230_s9, %s1087_s18 }
  0xa3   :  { %p1094_p8 = por %p1093_p7, %p1092_p6 }
  0xa5   :  { %p1095_p9 = pnand %p1094_p8, %p1088_p5 }
  0xa7   :  { %1098 = shalt.err (!%p1095_p9)  }
  0xa8   :  { %159 = dma.hbm_to_vmem [thread:$0]  %s146_s25, 16, %s1289_s0, [#allocation3 + $0x6] }
  0xa9   :  { %s1152_s22 = smov [#allocation2 + $0x7]   ;;  %s699_s28 = sshll.u32 %s698_s21, 4 }
  0xaa   :  { %s172_s20 = sshll.u32 %s1152_s22, 4  ;;  %s162_s10 = scalar_lea.hbm %s1415_s1, %s699_s28  ;;  %s173_s20 = int_to_ptr.vmem [resolvable:$true] %s172_s20 }
  0xab   :  { %s1099_s11 = scalar_lea.hbm %s162_s10, 16  ;;  %p1102_p11 = scmp.lt.s32.totalorder %s162_s10, %s1415_s1 }
  0xac   :  { %p1100_p10 = scmp.ne.s32.totalorder %s162_s10, %s1099_s11  ;;  %p1103_p12 = scmp.lt.s32.totalorder %s1221_s29, %s1099_s11 }
  0xae   :  { %p1104_p13 = por %p1103_p12, %p1102_p11 }
  0xb0   :  { %p1105_p0 = pnand %p1104_p13, %p1100_p10 }
  0xb2   :  { %1108 = shalt.err (!%p1105_p0)  }
  0xb3   :  { %s1109_s15 = scalar_lea.vmem %s173_s20, 16  ;;  %p1114_p2 = scmp.lt.s32.totalorder %s173_s20, %s1204_s14 }
  0xb4   :  { %p1110_p1 = scmp.ne.s32.totalorder %s173_s20, %s1109_s15  ;;  %p1115_p3 = scmp.lt.s32.totalorder %s1230_s9, %s1109_s15 }
  0xb6   :  { %p1116_p4 = por %p1115_p3, %p1114_p2 }
  0xb8   :  { %p1117_p5 = pnand %p1116_p4, %p1110_p1 }
  0xba   :  { %1120 = shalt.err (!%p1117_p5)  }
  0xbb   :  { %175 = dma.hbm_to_vmem [thread:$0]  %s162_s10, 16, %s173_s20, [#allocation3 + $0x7] }
  0xbc   :  { %1125 = dma.done.wait [#allocation3], 16 }
  0xbd   :  { %1126 = vsyncadd [#allocation3], 4294967280 }
  0xbe   :  { %1127 = dma.done.wait [#allocation3 + $0x1], 16 }
  0xbf   :  { %1128 = vsyncadd [#allocation3 + $0x1], 4294967280 }
  0xc0   :  { %1129 = dma.done.wait [#allocation3 + $0x2], 16 }
  0xc1   :  { %1130 = vsyncadd [#allocation3 + $0x2], 4294967280 }
  0xc2   :  { %1131 = dma.done.wait [#allocation3 + $0x3], 16 }
  0xc3   :  { %1132 = vsyncadd [#allocation3 + $0x3], 4294967280 }
  0xc4   :  { %1133 = dma.done.wait [#allocation3 + $0x4], 16 }
  0xc5   :  { %1134 = vsyncadd [#allocation3 + $0x4], 4294967280 }
  0xc6   :  { %1135 = dma.done.wait [#allocation3 + $0x5], 16 }
  0xc7   :  { %1136 = vsyncadd [#allocation3 + $0x5], 4294967280 }
  0xc8   :  { %1137 = dma.done.wait [#allocation3 + $0x6], 16 }
  0xc9   :  { %1138 = vsyncadd [#allocation3 + $0x6], 4294967280 }
  0xca   :  { %1139 = dma.done.wait [#allocation3 + $0x7], 16 }
  0xcb   :  { %1140 = vsyncadd [#allocation3 + $0x7], 4294967280  ;;  %v1153_v0 = vmov 0.0   ;;  %vm1154_vm0 = vmmov 0   ;;  %v203_v1 = vld [vmem:[%s1418_s4] sm:$0xff]  ;;  %s1155_s29 = smov 32  }
  0xcc   :  { %774 = vmatprep.subr.mxu0 %v1153_v0  ;;  %801 = vmatprep.subr.mxu1 %v1153_v0  ;;  %v221_v2 = vld [vmem:[#allocation7 + $0x58] sm:$0xff]  ;;  %v220_v4 = vld [vmem:[#allocation7 + $0x50] sm:$0xff]  ;;  %v219_v6 = vld [vmem:[#allocation7 + $0x48] sm:$0xff]  ;;  %vm208_vm1 = vcmask 261120   ;;  %vm229_vm2 = vcmask 785408   ;;  %vm601_vm3 = vcmask 523264  }
  0xcd   :  { %798 = vmatprep.mubr.msk.f32.mxu0 %vm1154_vm0, %v1153_v0  ;;  %825 = vmatprep.mubr.msk.f32.mxu1 %vm1154_vm0, %v1153_v0  ;;  %v321_v3 = vld [vmem:[#allocation7 + $0xb8] sm:$0xff]  ;;  %v320_v5 = vld [vmem:[#allocation7 + $0xb0] sm:$0xff]  ;;  %v319_v7 = vld [vmem:[#allocation7 + $0xa8] sm:$0xff] }
  0xce   :  { %205 = vrot.lane.b32.xlu0 %v203_v1, %s1155_s29  ;;  %775 = vmatpush3.msra.mxu0 %v221_v2  ;;  %v218_v8 = vld [vmem:[#allocation7 + $0x40] sm:$0xff]  ;;  %v217_v10 = vld [vmem:[#allocation7 + $0x38] sm:$0xff]  ;;  %v216_v12 = vld [vmem:[#allocation7 + $0x30] sm:$0xff] }
  0xcf   :  { %802 = vmatpush3.msra.mxu1 %v321_v3  ;;  %776 = vmatprep.subr.mxu0 %v1153_v0  ;;  %v318_v9 = vld [vmem:[#allocation7 + $0xa0] sm:$0xff]  ;;  %v317_v11 = vld [vmem:[#allocation7 + $0x98] sm:$0xff]  ;;  %v316_v13 = vld [vmem:[#allocation7 + $0x90] sm:$0xff] }
  0xd0   :  { %803 = vmatprep.subr.mxu1 %v1153_v0  ;;  %777 = vmatpush3.msra.mxu0 %v220_v4  ;;  %v215_v14 = vld [vmem:[#allocation7 + $0x28] sm:$0xff]  ;;  %v214_v16 = vld [vmem:[#allocation7 + $0x20] sm:$0xff]  ;;  %v213_v18 = vld [vmem:[#allocation7 + $0x18] sm:$0xff] }
  0xd1   :  { %804 = vmatpush3.msra.mxu1 %v320_v5  ;;  %778 = vmatprep.subr.mxu0 %v1153_v0  ;;  %v315_v15 = vld [vmem:[#allocation7 + $0x88] sm:$0xff]  ;;  %v314_v17 = vld [vmem:[#allocation7 + $0x80] sm:$0xff]  ;;  %v313_v19 = vld [vmem:[#allocation7 + $0x78] sm:$0xff] }
  0xd2   :  { %805 = vmatprep.subr.mxu1 %v1153_v0  ;;  %779 = vmatpush3.msra.mxu0 %v219_v6  ;;  %v212_v20 = vld [vmem:[#allocation7 + $0x10] sm:$0xff]  ;;  %v211_v22 = vld [vmem:[#allocation7 + $0x8] sm:$0xff]  ;;  %v210_v24 = vld [vmem:[#allocation7] sm:$0xff] }
  0xd3   :  { %806 = vmatpush3.msra.mxu1 %v319_v7  ;;  %780 = vmatprep.subr.mxu0 %v1153_v0  ;;  %v312_v21 = vld [vmem:[#allocation7 + $0x70] sm:$0xff]  ;;  %v311_v23 = vld [vmem:[#allocation7 + $0x68] sm:$0xff]  ;;  %v310_v25 = vld [vmem:[#allocation7 + $0x60] sm:$0xff] }
  0xd4   :  { %807 = vmatprep.subr.mxu1 %v1153_v0  ;;  %781 = vmatpush3.msra.mxu0 %v218_v8  ;;  %v201_v26 = vld [vmem:[#allocation2] sm:$0xff]  ;;  %v417_v32 = vld [vmem:[#allocation7 + $0x110] sm:$0xff]  ;;  %v416_v34 = vld [vmem:[#allocation7 + $0x108] sm:$0xff] }
  0xd5   :  { %808 = vmatpush3.msra.mxu1 %v318_v9  ;;  %782 = vmatprep.subr.mxu0 %v1153_v0  ;;  %v202_v27 = vmax.f32 %v201_v26, 0.0  ;;  %v418_v29 = vld [vmem:[#allocation7 + $0x118] sm:$0xff]  ;;  %v509_v33 = vld [vmem:[#allocation7 + $0x170] sm:$0xff]  ;;  %v508_v35 = vld [vmem:[#allocation7 + $0x168] sm:$0xff] }
  0xd6   :  { %809 = vmatprep.subr.mxu1 %v1153_v0  ;;  %783 = vmatpush3.msra.mxu0 %v217_v10  ;;  %v510_v30 = vld [vmem:[#allocation7 + $0x178] sm:$0xff]  ;;  %v415_v36 = vld [vmem:[#allocation7 + $0x100] sm:$0xff]  ;;  %v413_v40 = vld [vmem:[#allocation7 + $0xf0] sm:$0xff] }
  0xd7   :  { %810 = vmatpush3.msra.mxu1 %v317_v11  ;;  %784 = vmatprep.subr.mxu0 %v1153_v0  ;;  %v507_v37 = vld [vmem:[#allocation7 + $0x160] sm:$0xff]  ;;  %v414_v38 = vld [vmem:[#allocation7 + $0xf8] sm:$0xff]  ;;  %v505_v41 = vld [vmem:[#allocation7 + $0x150] sm:$0xff] }
  0xd8   :  { %811 = vmatprep.subr.mxu1 %v1153_v0  ;;  %785 = vmatpush3.msra.mxu0 %v216_v12  ;;  %v506_v39 = vld [vmem:[#allocation7 + $0x158] sm:$0xff]  ;;  %v412_v42 = vld [vmem:[#allocation7 + $0xe8] sm:$0xff]  ;;  %v411_v44 = vld [vmem:[#allocation7 + $0xe0] sm:$0xff] }
  0xd9   :  { %812 = vmatpush3.msra.mxu1 %v316_v13  ;;  %786 = vmatprep.subr.mxu0 %v1153_v0  ;;  %v504_v43 = vld [vmem:[#allocation7 + $0x148] sm:$0xff]  ;;  %v503_v45 = vld [vmem:[#allocation7 + $0x140] sm:$0xff]  ;;  %v410_v46 = vld [vmem:[#allocation7 + $0xd8] sm:$0xff] }
  0xda   :  { %813 = vmatprep.subr.mxu1 %v1153_v0  ;;  %787 = vmatpush3.msra.mxu0 %v215_v14  ;;  %v502_v47 = vld [vmem:[#allocation7 + $0x138] sm:$0xff]  ;;  %v409_v48 = vld [vmem:[#allocation7 + $0xd0] sm:$0xff]  ;;  %v408_v50 = vld [vmem:[#allocation7 + $0xc8] sm:$0xff] }
  0xdb   :  { %814 = vmatpush3.msra.mxu1 %v315_v15  ;;  %788 = vmatprep.subr.mxu0 %v1153_v0  ;;  %v501_v49 = vld [vmem:[#allocation7 + $0x130] sm:$0xff]  ;;  %v500_v51 = vld [vmem:[#allocation7 + $0x128] sm:$0xff]  ;;  %v407_v52 = vld [vmem:[#allocation7 + $0xc0] sm:$0xff] }
  0xdc   :  { %815 = vmatprep.subr.mxu1 %v1153_v0  ;;  %789 = vmatpush3.msra.mxu0 %v214_v16  ;;  %v499_v53 = vld [vmem:[#allocation7 + $0x120] sm:$0xff]  ;;  %v700_v54 = vld [vmem:[%s1417_s3] ss:$0 sm:$0xff]  ;;  %v704_v55 = vld [vmem:[%s1417_s3 + $0x1] ss:$0 sm:$0xff] }
  0xdd   :  { %816 = vmatpush3.msra.mxu1 %v314_v17  ;;  %790 = vmatprep.subr.mxu0 %v1153_v0  ;;  %v708_v4 = vld [vmem:[%s1417_s3 + $0x2] ss:$0 sm:$0xff]  ;;  %v711_v5 = vld [vmem:[%s1417_s3 + $0x3] ss:$0 sm:$0xff] }
  0xde   :  { %817 = vmatprep.subr.mxu1 %v1153_v0  ;;  %791 = vmatpush3.msra.mxu0 %v213_v18  ;;  %v595_v14 = vld [vmem:[%s1419_s5] sm:$0xff] }
  0xdf   :  { %818 = vmatpush3.msra.mxu1 %v313_v19  ;;  %792 = vmatprep.subr.mxu0 %v1153_v0 }
  0xe0   :  { %819 = vmatprep.subr.mxu1 %v1153_v0  ;;  %793 = vmatpush3.msra.mxu0 %v212_v20 }
  0xe1   :  { %820 = vmatpush3.msra.mxu1 %v312_v21  ;;  %794 = vmatprep.subr.mxu0 %v1153_v0 }
  0xe2   :  { %821 = vmatprep.subr.mxu1 %v1153_v0  ;;  %795 = vmatpush3.msra.mxu0 %v211_v22 }
  0xe3   :  { %822 = vmatpush3.msra.mxu1 %v311_v23  ;;  %796 = vmatprep.subr.mxu0 %v1153_v0 }
  0xe4   :  { %823 = vmatprep.subr.mxu1 %v1153_v0  ;;  %797 = vmatpush3.msra.mxu0 %v210_v24 }
  0xe5   :  { %824 = vmatpush3.msra.mxu1 %v310_v25  ;;  %828 = vmatprep.subr.mxu0 %v1153_v0 }
  0xe6   :  { %855 = vmatprep.subr.mxu1 %v1153_v0 }
 0x140   :  { %v206_v28 = vpop.permute.xlu0 %205 }
 0x141   :  { %v1357_v31 = vsel %vm208_vm1, %v202_v27, %v206_v28 }
 0x142   :  { %799 = vmatmul.mubr.msk.f32.vlgmr.msra.gmra.mxu0 %vm229_vm2, %v1357_v31  ;;  %826 = vmatmul.mubr.msk.f32.vlgmr.msra.gmra.mxu1 %vm229_vm2, %v1357_v31 }
 0x143   :  { %829 = vmatpush3.msra.mxu0 %v418_v29  ;;  %856 = vmatpush3.msra.mxu1 %v510_v30 }
 0x144   :  { %830 = vmatprep.subr.mxu0 %v1153_v0  ;;  %857 = vmatprep.subr.mxu1 %v1153_v0 }
 0x145   :  { %831 = vmatpush3.msra.mxu0 %v417_v32  ;;  %858 = vmatpush3.msra.mxu1 %v509_v33 }
 0x146   :  { %832 = vmatprep.subr.mxu0 %v1153_v0  ;;  %859 = vmatprep.subr.mxu1 %v1153_v0 }
 0x147   :  { %833 = vmatpush3.msra.mxu0 %v416_v34  ;;  %860 = vmatpush3.msra.mxu1 %v508_v35 }
 0x148   :  { %834 = vmatprep.subr.mxu0 %v1153_v0  ;;  %861 = vmatprep.subr.mxu1 %v1153_v0 }
 0x149   :  { %835 = vmatpush3.msra.mxu0 %v415_v36  ;;  %862 = vmatpush3.msra.mxu1 %v507_v37 }
 0x14a   :  { %836 = vmatprep.subr.mxu0 %v1153_v0  ;;  %863 = vmatprep.subr.mxu1 %v1153_v0 }
 0x14b   :  { %837 = vmatpush3.msra.mxu0 %v414_v38  ;;  %864 = vmatpush3.msra.mxu1 %v506_v39 }
 0x14c   :  { %838 = vmatprep.subr.mxu0 %v1153_v0  ;;  %865 = vmatprep.subr.mxu1 %v1153_v0 }
 0x14d   :  { %839 = vmatpush3.msra.mxu0 %v413_v40  ;;  %866 = vmatpush3.msra.mxu1 %v505_v41 }
 0x14e   :  { %840 = vmatprep.subr.mxu0 %v1153_v0  ;;  %867 = vmatprep.subr.mxu1 %v1153_v0 }
 0x14f   :  { %841 = vmatpush3.msra.mxu0 %v412_v42  ;;  %868 = vmatpush3.msra.mxu1 %v504_v43 }
 0x150   :  { %842 = vmatprep.subr.mxu0 %v1153_v0  ;;  %869 = vmatprep.subr.mxu1 %v1153_v0 }
 0x151   :  { %843 = vmatpush3.msra.mxu0 %v411_v44  ;;  %870 = vmatpush3.msra.mxu1 %v503_v45 }
 0x152   :  { %844 = vmatprep.subr.mxu0 %v1153_v0  ;;  %871 = vmatprep.subr.mxu1 %v1153_v0 }
 0x153   :  { %845 = vmatpush3.msra.mxu0 %v410_v46  ;;  %872 = vmatpush3.msra.mxu1 %v502_v47 }
 0x154   :  { %846 = vmatprep.subr.mxu0 %v1153_v0  ;;  %873 = vmatprep.subr.mxu1 %v1153_v0 }
 0x155   :  { %847 = vmatpush3.msra.mxu0 %v409_v48  ;;  %874 = vmatpush3.msra.mxu1 %v501_v49 }
 0x156   :  { %848 = vmatprep.subr.mxu0 %v1153_v0  ;;  %875 = vmatprep.subr.mxu1 %v1153_v0 }
 0x157   :  { %849 = vmatpush3.msra.mxu0 %v408_v50  ;;  %876 = vmatpush3.msra.mxu1 %v500_v51 }
 0x158   :  { %850 = vmatprep.subr.mxu0 %v1153_v0  ;;  %877 = vmatprep.subr.mxu1 %v1153_v0 }
 0x159   :  { %851 = vmatpush3.msra.mxu0 %v407_v52  ;;  %852 = vmatprep.mubr.msk.f32.mxu0 %vm1154_vm0, %v1153_v0 }
 0x15a   :  { %878 = vmatpush3.msra.mxu1 %v499_v53  ;;  %879 = vmatprep.mubr.msk.f32.mxu1 %vm1154_vm0, %v1153_v0 }
 0x15b   :  { %853 = vmatmul.mubr.msk.f32.vlgmr.msra.gmra.mxu0 %vm229_vm2, %v1357_v31  ;;  %880 = vmatmul.mubr.msk.f32.vlgmr.msra.gmra.mxu1 %vm229_vm2, %v1357_v31 }
 0x202   :  { %v299_v56 = vpop.f32.mrf.mxu0  ;;  %v396_v57 = vpop.f32.mrf.mxu1 }
 0x203   :  { %v300_v58 = vadd.f32 %v700_v54, %v299_v56  ;;  %v397_v59 = vadd.f32 %v704_v55, %v396_v57 }
 0x204   :  { %v800_v60 = vpop.f32.mrf.mxu0  ;;  %v827_v61 = vpop.f32.mrf.mxu1 }
 0x205   :  { %v702_v62 = vmul.f32 -1.442695, %v300_v58  ;;  %v706_v63 = vmul.f32 -1.442695, %v397_v59 }
 0x207   :  { %897 = vpow2.f32 %v706_v63 }
 0x208   :  { %899 = vpow2.f32 %v702_v62 }
 0x214   :  { %v898_v0 = vpop.eup %897 }
 0x215   :  { %v900_v1 = vpop.eup %899  ;;  %v403_v2 = vadd.f32 1.0, %v898_v0 }
 0x216   :  { %v306_v3 = vadd.f32 1.0, %v900_v1 }
 0x217   :  { %901 = vrcp.f32 %v403_v2 }
 0x218   :  { %903 = vrcp.f32 %v306_v3 }
 0x21b   :  { %v493_v6 = vpop.f32.mrf.mxu0  ;;  %v585_v7 = vpop.f32.mrf.mxu1 }
 0x21c   :  { %v494_v8 = vadd.f32 %v708_v4, %v493_v6  ;;  %v586_v9 = vadd.f32 %v711_v5, %v585_v7 }
 0x21d   :  { %v854_v10 = vpop.f32.mrf.mxu0  ;;  %v881_v11 = vpop.f32.mrf.mxu1 }
 0x21e   :  { %905 = vtanh.f32 %v494_v8  ;;  %v713_v12 = vmul.f32 -1.442695, %v586_v9 }
 0x220   :  { %907 = vpow2.f32 %v713_v12 }
 0x224   :  { %v902_v13 = vpop.eup %901 }
 0x225   :  { %v904_v15 = vpop.eup %903  ;;  %v596_v17 = vmul.f32 %v902_v13, %v595_v14 }
 0x22b   :  { %v906_v16 = vpop.eup %905 }
 0x22c   :  { %v597_v18 = vmul.f32 %v906_v16, %v904_v15 }
 0x22d   :  { %v908_v19 = vpop.eup %907 }
 0x22e   :  { %v598_v20 = vadd.f32 %v597_v18, %v596_v17  ;;  %v592_v21 = vadd.f32 1.0, %v908_v19 }
 0x230   :  { %909 = vtanh.f32 %v598_v20  ;;  %603 = vst.msk [vmem:[%s1421_s7] sm:$0xff] %vm601_vm3, %v598_v20 }
 0x231   :  { %911 = vrcp.f32 %v592_v21 }
 0x23d   :  { %v910_v22 = vpop.eup %909 }
 0x23e   :  { %v912_v23 = vpop.eup %911 }
 0x23f   :  { %v600_v24 = vmul.f32 %v912_v23, %v910_v22 }
 0x241   :  { %602 = vst.msk [vmem:[%s1420_s6] sm:$0xff] %vm601_vm3, %v600_v24 }
 0x242   :  { %612 = vsyncpa [#allocation5], 1 }
 0x243   :  { %613 = vsyncpa [#allocation6], 1 }
 0x244   :  { %614 = vsyncmov [#allocation3] }
 0x247   :  { %s615_s5 = vpop.sfrf %614 }
 0x248   :  { %p714_p6 = scmp.ne.s32.totalorder %s615_s5, 0 }
 0x24a   :  { %619 = shalt.err (%p714_p6)  }
 0x24b   :  { %621 = vsyncmov [#allocation3 + $0x1] }
 0x24e   :  { %s622_s18 = vpop.sfrf %621 }
 0x24f   :  { %p715_p7 = scmp.ne.s32.totalorder %s622_s18, 0 }
 0x251   :  { %626 = shalt.err (%p715_p7)  }
 0x252   :  { %628 = vsyncmov [#allocation3 + $0x2] }
 0x255   :  { %s629_s7 = vpop.sfrf %628 }
 0x256   :  { %p716_p8 = scmp.ne.s32.totalorder %s629_s7, 0 }
 0x258   :  { %633 = shalt.err (%p716_p8)  }
 0x259   :  { %635 = vsyncmov [#allocation3 + $0x3] }
 0x25c   :  { %s636_s22 = vpop.sfrf %635 }
 0x25d   :  { %p717_p9 = scmp.ne.s32.totalorder %s636_s22, 0 }
 0x25f   :  { %640 = shalt.err (%p717_p9)  }
 0x260   :  { %642 = vsyncmov [#allocation3 + $0x4] }
 0x263   :  { %s643_s6 = vpop.sfrf %642 }
 0x264   :  { %p718_p10 = scmp.ne.s32.totalorder %s643_s6, 0 }
 0x266   :  { %647 = shalt.err (%p718_p10)  }
 0x267   :  { %649 = vsyncmov [#allocation3 + $0x5] }
 0x26a   :  { %s650_s20 = vpop.sfrf %649 }
 0x26b   :  { %p719_p11 = scmp.ne.s32.totalorder %s650_s20, 0 }
 0x26d   :  { %654 = shalt.err (%p719_p11)  }
 0x26e   :  { %656 = vsyncmov [#allocation3 + $0x6] }
 0x271   :  { %s657_s28 = vpop.sfrf %656 }
 0x272   :  { %p720_p12 = scmp.ne.s32.totalorder %s657_s28, 0 }
 0x274   :  { %661 = shalt.err (%p720_p12)  }
 0x275   :  { %663 = vsyncmov [#allocation3 + $0x7] }
 0x278   :  { %s664_s30 = vpop.sfrf %663 }
 0x279   :  { %p721_p13 = scmp.ne.s32.totalorder %s664_s30, 0 }
 0x27b   :  { %668 = shalt.err (%p721_p13)  }

</bundles_post_ra>
